<compile_context>
chip_gen: v5e
topology: v5e:2x2
jax: 0.10.0
libtpu: 0.0.40
codegen_flags: <defaults>
</compile_context>

<pallas_src>
import functools

import jax
import jax.numpy as jnp
from jax.experimental import pallas as pl
from jax.experimental.pallas import tpu as pltpu


# ----------------------------- Pallas kernel ---------------------------------

def _meta_lstm_layer_kernel(gstack_ref, prex_ref, h0_ref, c0_ref, wh_ref,
                            hseq_ref, clast_ref, *,
                            dim_hidden, num_k, seq_len, num_nodes):
    """One batch element: full Meta_LSTM_Cell recurrence over T timesteps.

    Serial-path work per step: one stacked (K*N,N)@(N,H) MXU push for all K
    supports, K (N,H)@(H,4H) pushes for the h-path gates, and one fused tanh
    pass.  The carry-independent x-path (bias + sum_k (G_k@x_t)@Wx_k) arrives
    precomputed in prex_ref (computed in the wrapper, off the serial chain).
    """
    H, K, T, N = dim_hidden, num_k, seq_len, num_nodes
    G = gstack_ref[...]                        # (K*N, N), already in the MXU dtype
    mxu_dtype = G.dtype

    # Loop-invariant per-lane vectors (hoisted: computed once, reused every step).
    # Fused gate nonlinearity over the full 4H=128-lane tile with a single tanh:
    #   sigmoid(x) = 0.5*tanh(0.5*x) + 0.5   on the i/f/o lanes,
    #   tanh(x)                               on the g lanes.
    lane = jax.lax.broadcasted_iota(jnp.int32, (1, 4 * H), 1)
    is_ifo = lane < 3 * H
    pre_scale = jnp.where(is_ifo, jnp.float32(0.5), jnp.float32(1.0))
    post_scale = pre_scale                      # same 0.5 / 1.0 lane pattern
    post_shift = jnp.where(is_ifo, jnp.float32(0.5), jnp.float32(0.0))

    h = h0_ref[0]                               # (N, H) f32 carries
    c = c0_ref[0]
    h_slabs = []

    # T=8: fully unrolled recurrence (static t -> static ref indices and static
    # lane slices; equivalent to fori_loop(..., unroll=True) at this size).
    # TODO(synk): for large T switch to a partially-unrolled loop / T-chunk grid
    # axis with h/c carried in VMEM scratch to avoid vreg-spill / VMEM blowup.
    for t in range(T):
        # h-path gates: 1 stacked MXU push for all K supports, then K small pushes.
        GH = jnp.dot(G, h.astype(mxu_dtype),
                     preferred_element_type=jnp.float32)            # (K*N, H)
        gates = prex_ref[0, t]                                      # (N, 4H) f32
        for k in range(K):                                          # static K
            gates = gates + jnp.dot(
                GH[k * N:(k + 1) * N].astype(mxu_dtype),
                wh_ref[0, t * K + k],
                preferred_element_type=jnp.float32)                 # (N, 4H)

        # Single tanh pass (EUP) + hoisted per-lane affine; elementwise math in f32.
        act = post_scale * jnp.tanh(pre_scale * gates) + post_shift
        i = act[:, 0 * H:1 * H]
        f = act[:, 1 * H:2 * H]
        o = act[:, 2 * H:3 * H]
        g = act[:, 3 * H:4 * H]
        c = f * c + i * g
        h = o * jnp.tanh(c)
        h_slabs.append(h)

    # Lane-dense single stores: one (N, T*H)=(16,256) slab for the whole h
    # sequence and one (N, H) store for the final cell state.
    hseq_ref[0] = jnp.concatenate(h_slabs, axis=-1).astype(hseq_ref.dtype)
    clast_ref[0] = c.astype(clast_ref.dtype)


def run_meta_lstm_layer(G, x_seq, h0, c0, Wx, Wh, b_all, *,
                        mxu_dtype=jnp.bfloat16,
                        batch_dim_semantics=pltpu.PARALLEL):
    """Runs one Meta_LSTM layer over the full sequence.

    G [K,N,N], x_seq [B,T,N,C], h0/c0 [B,N,H],
    Wx [B,T,K,C,4H], Wh [B,T,K,H,4H], b_all [B,T,1,4H].
    Returns (h_seq [B,T,N,H], c_last [B,N,H]), both float32.

    batch_dim_semantics: pltpu.PARALLEL (default, safe everywhere).  On v7x pass
    pltpu.CORE_PARALLEL so the independent batch elements are actually sharded
    across the two TensorCores (plain "parallel" does not change codegen).
    """
    K, N, _ = G.shape
    B, T, _, C = x_seq.shape
    H = h0.shape[-1]
    F = 4 * H

    # --- carry-independent x-path, hoisted off the serial recurrence ----------
    # pre_x[b,t] = bias[b,t] + sum_k (G_k @ x[b,t]) @ Wx[b,t,k]      (B,T,N,4H)
    # Plain-JAX batched einsums: embarrassingly parallel dense matmuls at full
    # MXU efficiency, and Wx + bias drop out of the kernel's VMEM footprint.
    gx = jnp.einsum('knm,btmc->btknc', G, x_seq)
    pre_x = (jnp.einsum('btknc,btkcf->btnf', gx, Wx) + b_all).astype(jnp.float32)

    # --- MXU operands for the in-kernel h-path (bf16 by default) --------------
    g_stack = G.reshape(K * N, N).astype(mxu_dtype)
    wh = Wh.reshape(B, T * K, H, F).astype(mxu_dtype)

    kern = functools.partial(_meta_lstm_layer_kernel,
                             dim_hidden=H, num_k=K, seq_len=T, num_nodes=N)

    h_slab, c_last = pl.pallas_call(
        kern,
        out_shape=(jax.ShapeDtypeStruct((B, N, T * H), jnp.float32),
                   jax.ShapeDtypeStruct((B, N, H), jnp.float32)),
        grid_spec=pltpu.PrefetchScalarGridSpec(
            num_scalar_prefetch=0,
            grid=(B,),                                   # one grid step per batch element
            in_specs=[
                pl.BlockSpec((K * N, N), lambda b: (0, 0)),              # G (shared)
                pl.BlockSpec((1, T, N, F), lambda b: (b, 0, 0, 0)),      # pre_x(b)
                pl.BlockSpec((1, N, H), lambda b: (b, 0, 0)),            # init_h
                pl.BlockSpec((1, N, H), lambda b: (b, 0, 0)),            # init_c
                pl.BlockSpec((1, T * K, H, F), lambda b: (b, 0, 0, 0)),  # Wh(b)
            ],
            out_specs=[
                pl.BlockSpec((1, N, T * H), lambda b: (b, 0, 0)),        # h_seq slab (lane-dense)
                pl.BlockSpec((1, N, H), lambda b: (b, 0, 0)),            # c_last
            ],
        ),
        compiler_params=pltpu.CompilerParams(
            dimension_semantics=(batch_dim_semantics,),
            # explicit VMEM budget; today all blocks are << 1 MiB, but the full-T
            # Wh / pre_x blocks scale with T*H^2 -> add a T-chunk "arbitrary" grid
            # axis (h/c in VMEM scratch) before this limit is reached on v7x.
            vmem_limit_bytes=32 * 1024 * 1024,
        ),
    )(g_stack, pre_x, h0, c0, wh)

    # (B, N, T*H) -> (B, T, N, H)   (cheap XLA-side layout plumbing)
    h_seq = h_slab.reshape(B, N, T, H).transpose(0, 2, 1, 3)
    return h_seq, c_last


# ------------------------- parameters / meta-learner --------------------------

def _init_linear(key, fan_in, fan_out):
    k1, k2 = jax.random.split(key)
    bound = 1.0 / float(fan_in) ** 0.5
    w = jax.random.uniform(k1, (fan_in, fan_out), jnp.float32, -bound, bound)
    b = jax.random.uniform(k2, (fan_out,), jnp.float32, -bound, bound)
    return w, b


def init_encoder_params(key, dim_in, dim_hidden_list, K, dim_meta):
    """Deterministic init of learner_w / learner_b MLPs for each Meta_LSTM_Cell."""
    params = []
    prev = dim_in
    for H in dim_hidden_list:
        din = prev + H                      # conv_gate dim_in  (C + H)
        dout = 4 * H                        # conv_gate dim_out (4H)
        key, k0, k1, k2, k3 = jax.random.split(key, 5)
        w1, b1 = _init_linear(k0, dim_meta, 64)
        w2, b2 = _init_linear(k1, 64, K * din * dout)
        w1b, b1b = _init_linear(k2, dim_meta, 64)
        w2b, b2b = _init_linear(k3, 64, dout)
        params.append(dict(w1=w1, b1=b1, w2=w2, b2=b2,
                           w1b=w1b, b1b=b1b, w2b=w2b, b2b=b2b,
                           din=din, dout=dout, K=K))
        prev = H
    return params


def meta_weights(x_meta, p):
    """learner_w / learner_b applied to every (b, t) meta vector (plain-JAX glue).

    Returns W5 [B, T, K, C+H, 4H] and bias [B, T, 1, 4H]."""
    B, T, _ = x_meta.shape
    h1 = jax.nn.relu(x_meta @ p["w1"] + p["b1"])
    W5 = (h1 @ p["w2"] + p["b2"]).reshape(B, T, p["K"], p["din"], p["dout"])
    h1b = jax.nn.relu(x_meta @ p["w1b"] + p["b1b"])
    bias = (h1b @ p["w2b"] + p["b2b"]).reshape(B, T, 1, p["dout"])
    return W5, bias


# ------------------------------ Encoder forward --------------------------------

def encoder_forward_pallas(G, x_seq, init_h, init_c, x_meta, params,
                           mxu_dtype=jnp.bfloat16,
                           batch_dim_semantics=pltpu.PARALLEL):
    # TODO(synk): fuse the per-layer pallas_calls into a single kernel with the
    # per-layer h/c carried in VMEM scratch to avoid the inter-layer h_seq HBM
    # round trip; kept separate for clarity.
    current = x_seq
    out_h, out_c = [], []
    for i, p in enumerate(params):
        W5, b_all = meta_weights(x_meta, p)
        B, T, _, C = current.shape
        # Split the meta-learned GCN weight along its contraction dim: rows [0, C)
        # act on x_t, rows [C, C+H) act on h (== cat([x, h], -1) in the reference).
        Wx = W5[:, :, :, :C, :]
        Wh = W5[:, :, :, C:, :]
        h_seq, c_last = run_meta_lstm_layer(
            G, current, init_h[i], init_c[i], Wx, Wh, b_all,
            mxu_dtype=mxu_dtype, batch_dim_semantics=batch_dim_semantics)
        out_h.append(h_seq[:, -1])
        out_c.append(c_last)
        current = h_seq
    return out_h, out_c


def encoder_forward_ref(G, x_seq, init_h, init_c, x_meta, params):
    """Pure-JAX f32 reference mirroring the PyTorch module semantics."""
    K = G.shape[0]
    current = x_seq
    out_h, out_c = [], []
    for i, p in enumerate(params):
        W5, b_all = meta_weights(x_meta, p)
        B, T = current.shape[:2]
        W_all = W5.reshape(B, T, K * p["din"], p["dout"])
        h, c = init_h[i], init_c[i]
        h_list = []
        for t in range(T):
            x_t = current[:, t]
            combined = jnp.concatenate([x_t, h], axis=-1)
            supports = [jnp.einsum('ij,bjp->bip', G[k], combined) for k in range(K)]
            sc = jnp.concatenate(supports, axis=-1)
            gates = jnp.einsum('bnp,bpo->bno', sc, W_all[:, t]) + b_all[:, t]
            gi, gf, go, gg = jnp.split(gates, 4, axis=-1)
            ii, ff = jax.nn.sigmoid(gi), jax.nn.sigmoid(gf)
            oo, gg = jax.nn.sigmoid(go), jnp.tanh(gg)
            c = ff * c + ii * gg
            h = oo * jnp.tanh(c)
            h_list.append(h)
        out_h.append(h)
        out_c.append(c)
        current = jnp.stack(h_list, axis=1)
    return out_h, out_c


# ----------------------------------- main ---------------------------------------

if __name__ == "__main__":
    B, T, N, C, H, K, M = 2, 8, 16, 4, 32, 2, 8
    num_layers = 2
    dim_hidden_list = [H] * num_layers

    key = jax.random.PRNGKey(0)
    kG, kx, km, kp = jax.random.split(key, 4)
    G = jax.random.normal(kG, (K, N, N), jnp.float32) / jnp.sqrt(N)
    x_seq = jax.random.normal(kx, (B, T, N, C), jnp.float32)
    x_meta = jax.random.normal(km, (B, T, M), jnp.float32)
    init_h = [jnp.zeros((B, N, H), jnp.float32) for _ in range(num_layers)]
    init_c = [jnp.zeros((B, N, H), jnp.float32) for _ in range(num_layers)]

    params = init_encoder_params(kp, C, dim_hidden_list, K, M)

    ref_h, ref_c = encoder_forward_ref(G, x_seq, init_h, init_c, x_meta, params)

    # 1) f32 MXU operands: tight parity check against the f32 reference
    #    (sigmoid-via-tanh and the x/h-path reassociation are mathematically exact).
    out_h, out_c = encoder_forward_pallas(G, x_seq, init_h, init_c, x_meta, params,
                                          mxu_dtype=jnp.float32)
    jax.block_until_ready((out_h, out_c))
    for a, r in zip(out_h + out_c, ref_h + ref_c):
        assert a.shape == r.shape
        assert jnp.allclose(a, r, rtol=1e-3, atol=1e-3), float(jnp.max(jnp.abs(a - r)))

    # 2) bf16 MXU operands (recommended production setting): loose sanity bound,
    #    since bf16 input rounding accumulates through T=8 steps and 2 layers.
    out_h16, out_c16 = encoder_forward_pallas(G, x_seq, init_h, init_c, x_meta, params,
                                              mxu_dtype=jnp.bfloat16)
    jax.block_until_ready((out_h16, out_c16))
    for a, r in zip(out_h16 + out_c16, ref_h + ref_c):
        assert a.shape == r.shape
        assert float(jnp.max(jnp.abs(a - r))) < 0.15, float(jnp.max(jnp.abs(a - r)))

    print("KERNEL_OK")
</pallas_src>

<mosaic_0001>
module attributes {stable_mosaic.version = 11 : i64} {
  func.func @_meta_lstm_layer_kernel(%arg0: i32, %arg1: memref<32x16xf32, #tpu.memory_space<vmem>>, %arg2: memref<1x8x16x128xf32, #tpu.memory_space<vmem>>, %arg3: memref<1x16x32xf32, #tpu.memory_space<vmem>>, %arg4: memref<1x16x32xf32, #tpu.memory_space<vmem>>, %arg5: memref<1x16x32x128xf32, #tpu.memory_space<vmem>>, %arg6: memref<1x16x256xf32, #tpu.memory_space<vmem>>, %arg7: memref<1x16x32xf32, #tpu.memory_space<vmem>>) attributes {dimension_semantics = [#tpu.dimension_semantics<parallel>], iteration_bounds = array<i64: 2>, scalar_prefetch = 0 : i64, scratch_operands = 0 : i64, tpu.core_type = #tpu.core_type<tc>, window_params = [{pipeline_mode = #tpu.pipeline_mode<synchronous>, transform_indices = @transform_0, window_bounds = array<i64: 32, 16>}, {transform_indices = @transform_1, window_bounds = array<i64: 1, 8, 16, 128>}, {transform_indices = @transform_2, window_bounds = array<i64: 1, 16, 32>}, {transform_indices = @transform_3, window_bounds = array<i64: 1, 16, 32>}, {transform_indices = @transform_4, window_bounds = array<i64: 1, 16, 32, 128>}, {transform_indices = @transform_5, window_bounds = array<i64: 1, 16, 256>}, {transform_indices = @transform_6, window_bounds = array<i64: 1, 16, 32>}]} {
    %c0 = arith.constant 0 : index
    %c0_0 = arith.constant 0 : index
    %0 = vector.load %arg1[%c0, %c0_0] : memref<32x16xf32, #tpu.memory_space<vmem>>, vector<32x16xf32>
    %1 = tpu.iota {dimensions = array<i32: 1>} : vector<1x128xi32>
    %c96_i32 = arith.constant 96 : i32
    %2 = vector.broadcast %c96_i32 : i32 to vector<1x128xi32>
    %3 = arith.cmpi slt, %1, %2 : vector<1x128xi32>
    %cst = arith.constant 5.000000e-01 : f32
    %cst_1 = arith.constant 1.000000e+00 : f32
    %4 = vector.broadcast %cst : f32 to vector<1x128xf32>
    %5 = vector.broadcast %cst_1 : f32 to vector<1x128xf32>
    %6 = arith.select %3, %4, %5 : vector<1x128xi1>, vector<1x128xf32>
    %cst_2 = arith.constant 5.000000e-01 : f32
    %cst_3 = arith.constant 0.000000e+00 : f32
    %7 = vector.broadcast %cst_2 : f32 to vector<1x128xf32>
    %8 = vector.broadcast %cst_3 : f32 to vector<1x128xf32>
    %9 = arith.select %3, %7, %8 : vector<1x128xi1>, vector<1x128xf32>
    %c0_4 = arith.constant 0 : index
    %c0_5 = arith.constant 0 : index
    %c0_6 = arith.constant 0 : index
    %10 = vector.load %arg3[%c0_4, %c0_5, %c0_6] : memref<1x16x32xf32, #tpu.memory_space<vmem>>, vector<1x16x32xf32>
    %11 = vector.shape_cast %10 : vector<1x16x32xf32> to vector<16x32xf32>
    %c0_7 = arith.constant 0 : index
    %c0_8 = arith.constant 0 : index
    %c0_9 = arith.constant 0 : index
    %12 = vector.load %arg4[%c0_7, %c0_8, %c0_9] : memref<1x16x32xf32, #tpu.memory_space<vmem>>, vector<1x16x32xf32>
    %13 = vector.shape_cast %12 : vector<1x16x32xf32> to vector<16x32xf32>
    %cst_10 = arith.constant dense<0.000000e+00> : vector<32x32xf32>
    %14 = tpu.matmul %0, %11, %cst_10 {dimension_numbers = #tpu.dot_dimension_numbers<[1], [0], [0], [1], [0, 0, 1, 1], [], []>} : vector<32x16xf32>, vector<16x32xf32>, vector<32x32xf32> -> vector<32x32xf32>
    %c0_11 = arith.constant 0 : index
    %c0_12 = arith.constant 0 : index
    %c0_13 = arith.constant 0 : index
    %c0_14 = arith.constant 0 : index
    %15 = vector.load %arg2[%c0_11, %c0_12, %c0_13, %c0_14] : memref<1x8x16x128xf32, #tpu.memory_space<vmem>>, vector<1x1x16x128xf32>
    %16 = vector.shape_cast %15 : vector<1x1x16x128xf32> to vector<16x128xf32>
    %17 = vector.extract_strided_slice %14 {offsets = [0, 0], sizes = [16, 32], strides = [1, 1]} : vector<32x32xf32> to vector<16x32xf32>
    %c0_15 = arith.constant 0 : index
    %c0_16 = arith.constant 0 : index
    %c0_17 = arith.constant 0 : index
    %c0_18 = arith.constant 0 : index
    %18 = vector.load %arg5[%c0_15, %c0_16, %c0_17, %c0_18] : memref<1x16x32x128xf32, #tpu.memory_space<vmem>>, vector<1x1x32x128xf32>
    %19 = vector.shape_cast %18 : vector<1x1x32x128xf32> to vector<32x128xf32>
    %cst_19 = arith.constant dense<0.000000e+00> : vector<16x128xf32>
    %20 = tpu.matmul %17, %19, %cst_19 {dimension_numbers = #tpu.dot_dimension_numbers<[1], [0], [0], [1], [0, 0, 1, 1], [], []>} : vector<16x32xf32>, vector<32x128xf32>, vector<16x128xf32> -> vector<16x128xf32>
    %21 = arith.addf %16, %20 : vector<16x128xf32>
    %22 = vector.extract_strided_slice %14 {offsets = [16, 0], sizes = [16, 32], strides = [1, 1]} : vector<32x32xf32> to vector<16x32xf32>
    %c0_20 = arith.constant 0 : index
    %c1 = arith.constant 1 : index
    %c0_21 = arith.constant 0 : index
    %c0_22 = arith.constant 0 : index
    %23 = vector.load %arg5[%c0_20, %c1, %c0_21, %c0_22] : memref<1x16x32x128xf32, #tpu.memory_space<vmem>>, vector<1x1x32x128xf32>
    %24 = vector.shape_cast %23 : vector<1x1x32x128xf32> to vector<32x128xf32>
    %cst_23 = arith.constant dense<0.000000e+00> : vector<16x128xf32>
    %25 = tpu.matmul %22, %24, %cst_23 {dimension_numbers = #tpu.dot_dimension_numbers<[1], [0], [0], [1], [0, 0, 1, 1], [], []>} : vector<16x32xf32>, vector<32x128xf32>, vector<16x128xf32> -> vector<16x128xf32>
    %26 = arith.addf %21, %25 : vector<16x128xf32>
    %27 = vector.broadcast %6 : vector<1x128xf32> to vector<16x128xf32>
    %28 = arith.mulf %27, %26 : vector<16x128xf32>
    %29 = math.tanh %28 : vector<16x128xf32>
    %30 = vector.broadcast %6 : vector<1x128xf32> to vector<16x128xf32>
    %31 = arith.mulf %30, %29 : vector<16x128xf32>
    %32 = vector.broadcast %9 : vector<1x128xf32> to vector<16x128xf32>
    %33 = arith.addf %31, %32 : vector<16x128xf32>
    %34 = vector.extract_strided_slice %33 {offsets = [0, 0], sizes = [16, 32], strides = [1, 1]} : vector<16x128xf32> to vector<16x32xf32>
    %35 = vector.extract_strided_slice %33 {offsets = [0, 32], sizes = [16, 32], strides = [1, 1]} : vector<16x128xf32> to vector<16x32xf32>
    %36 = vector.extract_strided_slice %33 {offsets = [0, 64], sizes = [16, 32], strides = [1, 1]} : vector<16x128xf32> to vector<16x32xf32>
    %37 = vector.extract_strided_slice %33 {offsets = [0, 96], sizes = [16, 32], strides = [1, 1]} : vector<16x128xf32> to vector<16x32xf32>
    %38 = arith.mulf %35, %13 : vector<16x32xf32>
    %39 = arith.mulf %34, %37 : vector<16x32xf32>
    %40 = arith.addf %38, %39 : vector<16x32xf32>
    %41 = math.tanh %40 : vector<16x32xf32>
    %42 = arith.mulf %36, %41 : vector<16x32xf32>
    %cst_24 = arith.constant dense<0.000000e+00> : vector<32x32xf32>
    %43 = tpu.matmul %0, %42, %cst_24 {dimension_numbers = #tpu.dot_dimension_numbers<[1], [0], [0], [1], [0, 0, 1, 1], [], []>} : vector<32x16xf32>, vector<16x32xf32>, vector<32x32xf32> -> vector<32x32xf32>
    %c0_25 = arith.constant 0 : index
    %c1_26 = arith.constant 1 : index
    %c0_27 = arith.constant 0 : index
    %c0_28 = arith.constant 0 : index
    %44 = vector.load %arg2[%c0_25, %c1_26, %c0_27, %c0_28] : memref<1x8x16x128xf32, #tpu.memory_space<vmem>>, vector<1x1x16x128xf32>
    %45 = vector.shape_cast %44 : vector<1x1x16x128xf32> to vector<16x128xf32>
    %46 = vector.extract_strided_slice %43 {offsets = [0, 0], sizes = [16, 32], strides = [1, 1]} : vector<32x32xf32> to vector<16x32xf32>
    %c0_29 = arith.constant 0 : index
    %c2 = arith.constant 2 : index
    %c0_30 = arith.constant 0 : index
    %c0_31 = arith.constant 0 : index
    %47 = vector.load %arg5[%c0_29, %c2, %c0_30, %c0_31] : memref<1x16x32x128xf32, #tpu.memory_space<vmem>>, vector<1x1x32x128xf32>
    %48 = vector.shape_cast %47 : vector<1x1x32x128xf32> to vector<32x128xf32>
    %cst_32 = arith.constant dense<0.000000e+00> : vector<16x128xf32>
    %49 = tpu.matmul %46, %48, %cst_32 {dimension_numbers = #tpu.dot_dimension_numbers<[1], [0], [0], [1], [0, 0, 1, 1], [], []>} : vector<16x32xf32>, vector<32x128xf32>, vector<16x128xf32> -> vector<16x128xf32>
    %50 = arith.addf %45, %49 : vector<16x128xf32>
    %51 = vector.extract_strided_slice %43 {offsets = [16, 0], sizes = [16, 32], strides = [1, 1]} : vector<32x32xf32> to vector<16x32xf32>
    %c0_33 = arith.constant 0 : index
    %c3 = arith.constant 3 : index
    %c0_34 = arith.constant 0 : index
    %c0_35 = arith.constant 0 : index
    %52 = vector.load %arg5[%c0_33, %c3, %c0_34, %c0_35] : memref<1x16x32x128xf32, #tpu.memory_space<vmem>>, vector<1x1x32x128xf32>
    %53 = vector.shape_cast %52 : vector<1x1x32x128xf32> to vector<32x128xf32>
    %cst_36 = arith.constant dense<0.000000e+00> : vector<16x128xf32>
    %54 = tpu.matmul %51, %53, %cst_36 {dimension_numbers = #tpu.dot_dimension_numbers<[1], [0], [0], [1], [0, 0, 1, 1], [], []>} : vector<16x32xf32>, vector<32x128xf32>, vector<16x128xf32> -> vector<16x128xf32>
    %55 = arith.addf %50, %54 : vector<16x128xf32>
    %56 = vector.broadcast %6 : vector<1x128xf32> to vector<16x128xf32>
    %57 = arith.mulf %56, %55 : vector<16x128xf32>
    %58 = math.tanh %57 : vector<16x128xf32>
    %59 = vector.broadcast %6 : vector<1x128xf32> to vector<16x128xf32>
    %60 = arith.mulf %59, %58 : vector<16x128xf32>
    %61 = vector.broadcast %9 : vector<1x128xf32> to vector<16x128xf32>
    %62 = arith.addf %60, %61 : vector<16x128xf32>
    %63 = vector.extract_strided_slice %62 {offsets = [0, 0], sizes = [16, 32], strides = [1, 1]} : vector<16x128xf32> to vector<16x32xf32>
    %64 = vector.extract_strided_slice %62 {offsets = [0, 32], sizes = [16, 32], strides = [1, 1]} : vector<16x128xf32> to vector<16x32xf32>
    %65 = vector.extract_strided_slice %62 {offsets = [0, 64], sizes = [16, 32], strides = [1, 1]} : vector<16x128xf32> to vector<16x32xf32>
    %66 = vector.extract_strided_slice %62 {offsets = [0, 96], sizes = [16, 32], strides = [1, 1]} : vector<16x128xf32> to vector<16x32xf32>
    %67 = arith.mulf %64, %40 : vector<16x32xf32>
    %68 = arith.mulf %63, %66 : vector<16x32xf32>
    %69 = arith.addf %67, %68 : vector<16x32xf32>
    %70 = math.tanh %69 : vector<16x32xf32>
    %71 = arith.mulf %65, %70 : vector<16x32xf32>
    %cst_37 = arith.constant dense<0.000000e+00> : vector<32x32xf32>
    %72 = tpu.matmul %0, %71, %cst_37 {dimension_numbers = #tpu.dot_dimension_numbers<[1], [0], [0], [1], [0, 0, 1, 1], [], []>} : vector<32x16xf32>, vector<16x32xf32>, vector<32x32xf32> -> vector<32x32xf32>
    %c0_38 = arith.constant 0 : index
    %c2_39 = arith.constant 2 : index
    %c0_40 = arith.constant 0 : index
    %c0_41 = arith.constant 0 : index
    %73 = vector.load %arg2[%c0_38, %c2_39, %c0_40, %c0_41] : memref<1x8x16x128xf32, #tpu.memory_space<vmem>>, vector<1x1x16x128xf32>
    %74 = vector.shape_cast %73 : vector<1x1x16x128xf32> to vector<16x128xf32>
    %75 = vector.extract_strided_slice %72 {offsets = [0, 0], sizes = [16, 32], strides = [1, 1]} : vector<32x32xf32> to vector<16x32xf32>
    %c0_42 = arith.constant 0 : index
    %c4 = arith.constant 4 : index
    %c0_43 = arith.constant 0 : index
    %c0_44 = arith.constant 0 : index
    %76 = vector.load %arg5[%c0_42, %c4, %c0_43, %c0_44] : memref<1x16x32x128xf32, #tpu.memory_space<vmem>>, vector<1x1x32x128xf32>
    %77 = vector.shape_cast %76 : vector<1x1x32x128xf32> to vector<32x128xf32>
    %cst_45 = arith.constant dense<0.000000e+00> : vector<16x128xf32>
    %78 = tpu.matmul %75, %77, %cst_45 {dimension_numbers = #tpu.dot_dimension_numbers<[1], [0], [0], [1], [0, 0, 1, 1], [], []>} : vector<16x32xf32>, vector<32x128xf32>, vector<16x128xf32> -> vector<16x128xf32>
    %79 = arith.addf %74, %78 : vector<16x128xf32>
    %80 = vector.extract_strided_slice %72 {offsets = [16, 0], sizes = [16, 32], strides = [1, 1]} : vector<32x32xf32> to vector<16x32xf32>
    %c0_46 = arith.constant 0 : index
    %c5 = arith.constant 5 : index
    %c0_47 = arith.constant 0 : index
    %c0_48 = arith.constant 0 : index
    %81 = vector.load %arg5[%c0_46, %c5, %c0_47, %c0_48] : memref<1x16x32x128xf32, #tpu.memory_space<vmem>>, vector<1x1x32x128xf32>
    %82 = vector.shape_cast %81 : vector<1x1x32x128xf32> to vector<32x128xf32>
    %cst_49 = arith.constant dense<0.000000e+00> : vector<16x128xf32>
    %83 = tpu.matmul %80, %82, %cst_49 {dimension_numbers = #tpu.dot_dimension_numbers<[1], [0], [0], [1], [0, 0, 1, 1], [], []>} : vector<16x32xf32>, vector<32x128xf32>, vector<16x128xf32> -> vector<16x128xf32>
    %84 = arith.addf %79, %83 : vector<16x128xf32>
    %85 = vector.broadcast %6 : vector<1x128xf32> to vector<16x128xf32>
    %86 = arith.mulf %85, %84 : vector<16x128xf32>
    %87 = math.tanh %86 : vector<16x128xf32>
    %88 = vector.broadcast %6 : vector<1x128xf32> to vector<16x128xf32>
    %89 = arith.mulf %88, %87 : vector<16x128xf32>
    %90 = vector.broadcast %9 : vector<1x128xf32> to vector<16x128xf32>
    %91 = arith.addf %89, %90 : vector<16x128xf32>
    %92 = vector.extract_strided_slice %91 {offsets = [0, 0], sizes = [16, 32], strides = [1, 1]} : vector<16x128xf32> to vector<16x32xf32>
    %93 = vector.extract_strided_slice %91 {offsets = [0, 32], sizes = [16, 32], strides = [1, 1]} : vector<16x128xf32> to vector<16x32xf32>
    %94 = vector.extract_strided_slice %91 {offsets = [0, 64], sizes = [16, 32], strides = [1, 1]} : vector<16x128xf32> to vector<16x32xf32>
    %95 = vector.extract_strided_slice %91 {offsets = [0, 96], sizes = [16, 32], strides = [1, 1]} : vector<16x128xf32> to vector<16x32xf32>
    %96 = arith.mulf %93, %69 : vector<16x32xf32>
    %97 = arith.mulf %92, %95 : vector<16x32xf32>
    %98 = arith.addf %96, %97 : vector<16x32xf32>
    %99 = math.tanh %98 : vector<16x32xf32>
    %100 = arith.mulf %94, %99 : vector<16x32xf32>
    %cst_50 = arith.constant dense<0.000000e+00> : vector<32x32xf32>
    %101 = tpu.matmul %0, %100, %cst_50 {dimension_numbers = #tpu.dot_dimension_numbers<[1], [0], [0], [1], [0, 0, 1, 1], [], []>} : vector<32x16xf32>, vector<16x32xf32>, vector<32x32xf32> -> vector<32x32xf32>
    %c0_51 = arith.constant 0 : index
    %c3_52 = arith.constant 3 : index
    %c0_53 = arith.constant 0 : index
    %c0_54 = arith.constant 0 : index
    %102 = vector.load %arg2[%c0_51, %c3_52, %c0_53, %c0_54] : memref<1x8x16x128xf32, #tpu.memory_space<vmem>>, vector<1x1x16x128xf32>
    %103 = vector.shape_cast %102 : vector<1x1x16x128xf32> to vector<16x128xf32>
    %104 = vector.extract_strided_slice %101 {offsets = [0, 0], sizes = [16, 32], strides = [1, 1]} : vector<32x32xf32> to vector<16x32xf32>
    %c0_55 = arith.constant 0 : index
    %c6 = arith.constant 6 : index
    %c0_56 = arith.constant 0 : index
    %c0_57 = arith.constant 0 : index
    %105 = vector.load %arg5[%c0_55, %c6, %c0_56, %c0_57] : memref<1x16x32x128xf32, #tpu.memory_space<vmem>>, vector<1x1x32x128xf32>
    %106 = vector.shape_cast %105 : vector<1x1x32x128xf32> to vector<32x128xf32>
    %cst_58 = arith.constant dense<0.000000e+00> : vector<16x128xf32>
    %107 = tpu.matmul %104, %106, %cst_58 {dimension_numbers = #tpu.dot_dimension_numbers<[1], [0], [0], [1], [0, 0, 1, 1], [], []>} : vector<16x32xf32>, vector<32x128xf32>, vector<16x128xf32> -> vector<16x128xf32>
    %108 = arith.addf %103, %107 : vector<16x128xf32>
    %109 = vector.extract_strided_slice %101 {offsets = [16, 0], sizes = [16, 32], strides = [1, 1]} : vector<32x32xf32> to vector<16x32xf32>
    %c0_59 = arith.constant 0 : index
    %c7 = arith.constant 7 : index
    %c0_60 = arith.constant 0 : index
    %c0_61 = arith.constant 0 : index
    %110 = vector.load %arg5[%c0_59, %c7, %c0_60, %c0_61] : memref<1x16x32x128xf32, #tpu.memory_space<vmem>>, vector<1x1x32x128xf32>
    %111 = vector.shape_cast %110 : vector<1x1x32x128xf32> to vector<32x128xf32>
    %cst_62 = arith.constant dense<0.000000e+00> : vector<16x128xf32>
    %112 = tpu.matmul %109, %111, %cst_62 {dimension_numbers = #tpu.dot_dimension_numbers<[1], [0], [0], [1], [0, 0, 1, 1], [], []>} : vector<16x32xf32>, vector<32x128xf32>, vector<16x128xf32> -> vector<16x128xf32>
    %113 = arith.addf %108, %112 : vector<16x128xf32>
    %114 = vector.broadcast %6 : vector<1x128xf32> to vector<16x128xf32>
    %115 = arith.mulf %114, %113 : vector<16x128xf32>
    %116 = math.tanh %115 : vector<16x128xf32>
    %117 = vector.broadcast %6 : vector<1x128xf32> to vector<16x128xf32>
    %118 = arith.mulf %117, %116 : vector<16x128xf32>
    %119 = vector.broadcast %9 : vector<1x128xf32> to vector<16x128xf32>
    %120 = arith.addf %118, %119 : vector<16x128xf32>
    %121 = vector.extract_strided_slice %120 {offsets = [0, 0], sizes = [16, 32], strides = [1, 1]} : vector<16x128xf32> to vector<16x32xf32>
    %122 = vector.extract_strided_slice %120 {offsets = [0, 32], sizes = [16, 32], strides = [1, 1]} : vector<16x128xf32> to vector<16x32xf32>
    %123 = vector.extract_strided_slice %120 {offsets = [0, 64], sizes = [16, 32], strides = [1, 1]} : vector<16x128xf32> to vector<16x32xf32>
    %124 = vector.extract_strided_slice %120 {offsets = [0, 96], sizes = [16, 32], strides = [1, 1]} : vector<16x128xf32> to vector<16x32xf32>
    %125 = arith.mulf %122, %98 : vector<16x32xf32>
    %126 = arith.mulf %121, %124 : vector<16x32xf32>
    %127 = arith.addf %125, %126 : vector<16x32xf32>
    %128 = math.tanh %127 : vector<16x32xf32>
    %129 = arith.mulf %123, %128 : vector<16x32xf32>
    %cst_63 = arith.constant dense<0.000000e+00> : vector<32x32xf32>
    %130 = tpu.matmul %0, %129, %cst_63 {dimension_numbers = #tpu.dot_dimension_numbers<[1], [0], [0], [1], [0, 0, 1, 1], [], []>} : vector<32x16xf32>, vector<16x32xf32>, vector<32x32xf32> -> vector<32x32xf32>
    %c0_64 = arith.constant 0 : index
    %c4_65 = arith.constant 4 : index
    %c0_66 = arith.constant 0 : index
    %c0_67 = arith.constant 0 : index
    %131 = vector.load %arg2[%c0_64, %c4_65, %c0_66, %c0_67] : memref<1x8x16x128xf32, #tpu.memory_space<vmem>>, vector<1x1x16x128xf32>
    %132 = vector.shape_cast %131 : vector<1x1x16x128xf32> to vector<16x128xf32>
    %133 = vector.extract_strided_slice %130 {offsets = [0, 0], sizes = [16, 32], strides = [1, 1]} : vector<32x32xf32> to vector<16x32xf32>
    %c0_68 = arith.constant 0 : index
    %c8 = arith.constant 8 : index
    %c0_69 = arith.constant 0 : index
    %c0_70 = arith.constant 0 : index
    %134 = vector.load %arg5[%c0_68, %c8, %c0_69, %c0_70] : memref<1x16x32x128xf32, #tpu.memory_space<vmem>>, vector<1x1x32x128xf32>
    %135 = vector.shape_cast %134 : vector<1x1x32x128xf32> to vector<32x128xf32>
    %cst_71 = arith.constant dense<0.000000e+00> : vector<16x128xf32>
    %136 = tpu.matmul %133, %135, %cst_71 {dimension_numbers = #tpu.dot_dimension_numbers<[1], [0], [0], [1], [0, 0, 1, 1], [], []>} : vector<16x32xf32>, vector<32x128xf32>, vector<16x128xf32> -> vector<16x128xf32>
    %137 = arith.addf %132, %136 : vector<16x128xf32>
    %138 = vector.extract_strided_slice %130 {offsets = [16, 0], sizes = [16, 32], strides = [1, 1]} : vector<32x32xf32> to vector<16x32xf32>
    %c0_72 = arith.constant 0 : index
    %c9 = arith.constant 9 : index
    %c0_73 = arith.constant 0 : index
    %c0_74 = arith.constant 0 : index
    %139 = vector.load %arg5[%c0_72, %c9, %c0_73, %c0_74] : memref<1x16x32x128xf32, #tpu.memory_space<vmem>>, vector<1x1x32x128xf32>
    %140 = vector.shape_cast %139 : vector<1x1x32x128xf32> to vector<32x128xf32>
    %cst_75 = arith.constant dense<0.000000e+00> : vector<16x128xf32>
    %141 = tpu.matmul %138, %140, %cst_75 {dimension_numbers = #tpu.dot_dimension_numbers<[1], [0], [0], [1], [0, 0, 1, 1], [], []>} : vector<16x32xf32>, vector<32x128xf32>, vector<16x128xf32> -> vector<16x128xf32>
    %142 = arith.addf %137, %141 : vector<16x128xf32>
    %143 = vector.broadcast %6 : vector<1x128xf32> to vector<16x128xf32>
    %144 = arith.mulf %143, %142 : vector<16x128xf32>
    %145 = math.tanh %144 : vector<16x128xf32>
    %146 = vector.broadcast %6 : vector<1x128xf32> to vector<16x128xf32>
    %147 = arith.mulf %146, %145 : vector<16x128xf32>
    %148 = vector.broadcast %9 : vector<1x128xf32> to vector<16x128xf32>
    %149 = arith.addf %147, %148 : vector<16x128xf32>
    %150 = vector.extract_strided_slice %149 {offsets = [0, 0], sizes = [16, 32], strides = [1, 1]} : vector<16x128xf32> to vector<16x32xf32>
    %151 = vector.extract_strided_slice %149 {offsets = [0, 32], sizes = [16, 32], strides = [1, 1]} : vector<16x128xf32> to vector<16x32xf32>
    %152 = vector.extract_strided_slice %149 {offsets = [0, 64], sizes = [16, 32], strides = [1, 1]} : vector<16x128xf32> to vector<16x32xf32>
    %153 = vector.extract_strided_slice %149 {offsets = [0, 96], sizes = [16, 32], strides = [1, 1]} : vector<16x128xf32> to vector<16x32xf32>
    %154 = arith.mulf %151, %127 : vector<16x32xf32>
    %155 = arith.mulf %150, %153 : vector<16x32xf32>
    %156 = arith.addf %154, %155 : vector<16x32xf32>
    %157 = math.tanh %156 : vector<16x32xf32>
    %158 = arith.mulf %152, %157 : vector<16x32xf32>
    %cst_76 = arith.constant dense<0.000000e+00> : vector<32x32xf32>
    %159 = tpu.matmul %0, %158, %cst_76 {dimension_numbers = #tpu.dot_dimension_numbers<[1], [0], [0], [1], [0, 0, 1, 1], [], []>} : vector<32x16xf32>, vector<16x32xf32>, vector<32x32xf32> -> vector<32x32xf32>
    %c0_77 = arith.constant 0 : index
    %c5_78 = arith.constant 5 : index
    %c0_79 = arith.constant 0 : index
    %c0_80 = arith.constant 0 : index
    %160 = vector.load %arg2[%c0_77, %c5_78, %c0_79, %c0_80] : memref<1x8x16x128xf32, #tpu.memory_space<vmem>>, vector<1x1x16x128xf32>
    %161 = vector.shape_cast %160 : vector<1x1x16x128xf32> to vector<16x128xf32>
    %162 = vector.extract_strided_slice %159 {offsets = [0, 0], sizes = [16, 32], strides = [1, 1]} : vector<32x32xf32> to vector<16x32xf32>
    %c0_81 = arith.constant 0 : index
    %c10 = arith.constant 10 : index
    %c0_82 = arith.constant 0 : index
    %c0_83 = arith.constant 0 : index
    %163 = vector.load %arg5[%c0_81, %c10, %c0_82, %c0_83] : memref<1x16x32x128xf32, #tpu.memory_space<vmem>>, vector<1x1x32x128xf32>
    %164 = vector.shape_cast %163 : vector<1x1x32x128xf32> to vector<32x128xf32>
    %cst_84 = arith.constant dense<0.000000e+00> : vector<16x128xf32>
    %165 = tpu.matmul %162, %164, %cst_84 {dimension_numbers = #tpu.dot_dimension_numbers<[1], [0], [0], [1], [0, 0, 1, 1], [], []>} : vector<16x32xf32>, vector<32x128xf32>, vector<16x128xf32> -> vector<16x128xf32>
    %166 = arith.addf %161, %165 : vector<16x128xf32>
    %167 = vector.extract_strided_slice %159 {offsets = [16, 0], sizes = [16, 32], strides = [1, 1]} : vector<32x32xf32> to vector<16x32xf32>
    %c0_85 = arith.constant 0 : index
    %c11 = arith.constant 11 : index
    %c0_86 = arith.constant 0 : index
    %c0_87 = arith.constant 0 : index
    %168 = vector.load %arg5[%c0_85, %c11, %c0_86, %c0_87] : memref<1x16x32x128xf32, #tpu.memory_space<vmem>>, vector<1x1x32x128xf32>
    %169 = vector.shape_cast %168 : vector<1x1x32x128xf32> to vector<32x128xf32>
    %cst_88 = arith.constant dense<0.000000e+00> : vector<16x128xf32>
    %170 = tpu.matmul %167, %169, %cst_88 {dimension_numbers = #tpu.dot_dimension_numbers<[1], [0], [0], [1], [0, 0, 1, 1], [], []>} : vector<16x32xf32>, vector<32x128xf32>, vector<16x128xf32> -> vector<16x128xf32>
    %171 = arith.addf %166, %170 : vector<16x128xf32>
    %172 = vector.broadcast %6 : vector<1x128xf32> to vector<16x128xf32>
    %173 = arith.mulf %172, %171 : vector<16x128xf32>
    %174 = math.tanh %173 : vector<16x128xf32>
    %175 = vector.broadcast %6 : vector<1x128xf32> to vector<16x128xf32>
    %176 = arith.mulf %175, %174 : vector<16x128xf32>
    %177 = vector.broadcast %9 : vector<1x128xf32> to vector<16x128xf32>
    %178 = arith.addf %176, %177 : vector<16x128xf32>
    %179 = vector.extract_strided_slice %178 {offsets = [0, 0], sizes = [16, 32], strides = [1, 1]} : vector<16x128xf32> to vector<16x32xf32>
    %180 = vector.extract_strided_slice %178 {offsets = [0, 32], sizes = [16, 32], strides = [1, 1]} : vector<16x128xf32> to vector<16x32xf32>
    %181 = vector.extract_strided_slice %178 {offsets = [0, 64], sizes = [16, 32], strides = [1, 1]} : vector<16x128xf32> to vector<16x32xf32>
    %182 = vector.extract_strided_slice %178 {offsets = [0, 96], sizes = [16, 32], strides = [1, 1]} : vector<16x128xf32> to vector<16x32xf32>
    %183 = arith.mulf %180, %156 : vector<16x32xf32>
    %184 = arith.mulf %179, %182 : vector<16x32xf32>
    %185 = arith.addf %183, %184 : vector<16x32xf32>
    %186 = math.tanh %185 : vector<16x32xf32>
    %187 = arith.mulf %181, %186 : vector<16x32xf32>
    %cst_89 = arith.constant dense<0.000000e+00> : vector<32x32xf32>
    %188 = tpu.matmul %0, %187, %cst_89 {dimension_numbers = #tpu.dot_dimension_numbers<[1], [0], [0], [1], [0, 0, 1, 1], [], []>} : vector<32x16xf32>, vector<16x32xf32>, vector<32x32xf32> -> vector<32x32xf32>
    %c0_90 = arith.constant 0 : index
    %c6_91 = arith.constant 6 : index
    %c0_92 = arith.constant 0 : index
    %c0_93 = arith.constant 0 : index
    %189 = vector.load %arg2[%c0_90, %c6_91, %c0_92, %c0_93] : memref<1x8x16x128xf32, #tpu.memory_space<vmem>>, vector<1x1x16x128xf32>
    %190 = vector.shape_cast %189 : vector<1x1x16x128xf32> to vector<16x128xf32>
    %191 = vector.extract_strided_slice %188 {offsets = [0, 0], sizes = [16, 32], strides = [1, 1]} : vector<32x32xf32> to vector<16x32xf32>
    %c0_94 = arith.constant 0 : index
    %c12 = arith.constant 12 : index
    %c0_95 = arith.constant 0 : index
    %c0_96 = arith.constant 0 : index
    %192 = vector.load %arg5[%c0_94, %c12, %c0_95, %c0_96] : memref<1x16x32x128xf32, #tpu.memory_space<vmem>>, vector<1x1x32x128xf32>
    %193 = vector.shape_cast %192 : vector<1x1x32x128xf32> to vector<32x128xf32>
    %cst_97 = arith.constant dense<0.000000e+00> : vector<16x128xf32>
    %194 = tpu.matmul %191, %193, %cst_97 {dimension_numbers = #tpu.dot_dimension_numbers<[1], [0], [0], [1], [0, 0, 1, 1], [], []>} : vector<16x32xf32>, vector<32x128xf32>, vector<16x128xf32> -> vector<16x128xf32>
    %195 = arith.addf %190, %194 : vector<16x128xf32>
    %196 = vector.extract_strided_slice %188 {offsets = [16, 0], sizes = [16, 32], strides = [1, 1]} : vector<32x32xf32> to vector<16x32xf32>
    %c0_98 = arith.constant 0 : index
    %c13 = arith.constant 13 : index
    %c0_99 = arith.constant 0 : index
    %c0_100 = arith.constant 0 : index
    %197 = vector.load %arg5[%c0_98, %c13, %c0_99, %c0_100] : memref<1x16x32x128xf32, #tpu.memory_space<vmem>>, vector<1x1x32x128xf32>
    %198 = vector.shape_cast %197 : vector<1x1x32x128xf32> to vector<32x128xf32>
    %cst_101 = arith.constant dense<0.000000e+00> : vector<16x128xf32>
    %199 = tpu.matmul %196, %198, %cst_101 {dimension_numbers = #tpu.dot_dimension_numbers<[1], [0], [0], [1], [0, 0, 1, 1], [], []>} : vector<16x32xf32>, vector<32x128xf32>, vector<16x128xf32> -> vector<16x128xf32>
    %200 = arith.addf %195, %199 : vector<16x128xf32>
    %201 = vector.broadcast %6 : vector<1x128xf32> to vector<16x128xf32>
    %202 = arith.mulf %201, %200 : vector<16x128xf32>
    %203 = math.tanh %202 : vector<16x128xf32>
    %204 = vector.broadcast %6 : vector<1x128xf32> to vector<16x128xf32>
    %205 = arith.mulf %204, %203 : vector<16x128xf32>
    %206 = vector.broadcast %9 : vector<1x128xf32> to vector<16x128xf32>
    %207 = arith.addf %205, %206 : vector<16x128xf32>
    %208 = vector.extract_strided_slice %207 {offsets = [0, 0], sizes = [16, 32], strides = [1, 1]} : vector<16x128xf32> to vector<16x32xf32>
    %209 = vector.extract_strided_slice %207 {offsets = [0, 32], sizes = [16, 32], strides = [1, 1]} : vector<16x128xf32> to vector<16x32xf32>
    %210 = vector.extract_strided_slice %207 {offsets = [0, 64], sizes = [16, 32], strides = [1, 1]} : vector<16x128xf32> to vector<16x32xf32>
    %211 = vector.extract_strided_slice %207 {offsets = [0, 96], sizes = [16, 32], strides = [1, 1]} : vector<16x128xf32> to vector<16x32xf32>
    %212 = arith.mulf %209, %185 : vector<16x32xf32>
    %213 = arith.mulf %208, %211 : vector<16x32xf32>
    %214 = arith.addf %212, %213 : vector<16x32xf32>
    %215 = math.tanh %214 : vector<16x32xf32>
    %216 = arith.mulf %210, %215 : vector<16x32xf32>
    %cst_102 = arith.constant dense<0.000000e+00> : vector<32x32xf32>
    %217 = tpu.matmul %0, %216, %cst_102 {dimension_numbers = #tpu.dot_dimension_numbers<[1], [0], [0], [1], [0, 0, 1, 1], [], []>} : vector<32x16xf32>, vector<16x32xf32>, vector<32x32xf32> -> vector<32x32xf32>
    %c0_103 = arith.constant 0 : index
    %c7_104 = arith.constant 7 : index
    %c0_105 = arith.constant 0 : index
    %c0_106 = arith.constant 0 : index
    %218 = vector.load %arg2[%c0_103, %c7_104, %c0_105, %c0_106] : memref<1x8x16x128xf32, #tpu.memory_space<vmem>>, vector<1x1x16x128xf32>
    %219 = vector.shape_cast %218 : vector<1x1x16x128xf32> to vector<16x128xf32>
    %220 = vector.extract_strided_slice %217 {offsets = [0, 0], sizes = [16, 32], strides = [1, 1]} : vector<32x32xf32> to vector<16x32xf32>
    %c0_107 = arith.constant 0 : index
    %c14 = arith.constant 14 : index
    %c0_108 = arith.constant 0 : index
    %c0_109 = arith.constant 0 : index
    %221 = vector.load %arg5[%c0_107, %c14, %c0_108, %c0_109] : memref<1x16x32x128xf32, #tpu.memory_space<vmem>>, vector<1x1x32x128xf32>
    %222 = vector.shape_cast %221 : vector<1x1x32x128xf32> to vector<32x128xf32>
    %cst_110 = arith.constant dense<0.000000e+00> : vector<16x128xf32>
    %223 = tpu.matmul %220, %222, %cst_110 {dimension_numbers = #tpu.dot_dimension_numbers<[1], [0], [0], [1], [0, 0, 1, 1], [], []>} : vector<16x32xf32>, vector<32x128xf32>, vector<16x128xf32> -> vector<16x128xf32>
    %224 = arith.addf %219, %223 : vector<16x128xf32>
    %225 = vector.extract_strided_slice %217 {offsets = [16, 0], sizes = [16, 32], strides = [1, 1]} : vector<32x32xf32> to vector<16x32xf32>
    %c0_111 = arith.constant 0 : index
    %c15 = arith.constant 15 : index
    %c0_112 = arith.constant 0 : index
    %c0_113 = arith.constant 0 : index
    %226 = vector.load %arg5[%c0_111, %c15, %c0_112, %c0_113] : memref<1x16x32x128xf32, #tpu.memory_space<vmem>>, vector<1x1x32x128xf32>
    %227 = vector.shape_cast %226 : vector<1x1x32x128xf32> to vector<32x128xf32>
    %cst_114 = arith.constant dense<0.000000e+00> : vector<16x128xf32>
    %228 = tpu.matmul %225, %227, %cst_114 {dimension_numbers = #tpu.dot_dimension_numbers<[1], [0], [0], [1], [0, 0, 1, 1], [], []>} : vector<16x32xf32>, vector<32x128xf32>, vector<16x128xf32> -> vector<16x128xf32>
    %229 = arith.addf %224, %228 : vector<16x128xf32>
    %230 = vector.broadcast %6 : vector<1x128xf32> to vector<16x128xf32>
    %231 = arith.mulf %230, %229 : vector<16x128xf32>
    %232 = math.tanh %231 : vector<16x128xf32>
    %233 = vector.broadcast %6 : vector<1x128xf32> to vector<16x128xf32>
    %234 = arith.mulf %233, %232 : vector<16x128xf32>
    %235 = vector.broadcast %9 : vector<1x128xf32> to vector<16x128xf32>
    %236 = arith.addf %234, %235 : vector<16x128xf32>
    %237 = vector.extract_strided_slice %236 {offsets = [0, 0], sizes = [16, 32], strides = [1, 1]} : vector<16x128xf32> to vector<16x32xf32>
    %238 = vector.extract_strided_slice %236 {offsets = [0, 32], sizes = [16, 32], strides = [1, 1]} : vector<16x128xf32> to vector<16x32xf32>
    %239 = vector.extract_strided_slice %236 {offsets = [0, 64], sizes = [16, 32], strides = [1, 1]} : vector<16x128xf32> to vector<16x32xf32>
    %240 = vector.extract_strided_slice %236 {offsets = [0, 96], sizes = [16, 32], strides = [1, 1]} : vector<16x128xf32> to vector<16x32xf32>
    %241 = arith.mulf %238, %214 : vector<16x32xf32>
    %242 = arith.mulf %237, %240 : vector<16x32xf32>
    %243 = arith.addf %241, %242 : vector<16x32xf32>
    %244 = math.tanh %243 : vector<16x32xf32>
    %245 = arith.mulf %239, %244 : vector<16x32xf32>
    %246 = tpu.concatenate %42, %71, %100, %129, %158, %187, %216, %245 in 1 : vector<16x32xf32>, vector<16x32xf32>, vector<16x32xf32>, vector<16x32xf32>, vector<16x32xf32>, vector<16x32xf32>, vector<16x32xf32>, vector<16x32xf32> -> vector<16x256xf32>
    %c0_115 = arith.constant 0 : index
    %c0_116 = arith.constant 0 : index
    %c0_117 = arith.constant 0 : index
    %247 = vector.load %arg6[%c0_115, %c0_116, %c0_117] : memref<1x16x256xf32, #tpu.memory_space<vmem>>, vector<1x16x256xf32>
    %248 = vector.shape_cast %247 : vector<1x16x256xf32> to vector<16x256xf32>
    %249 = vector.shape_cast %246 : vector<16x256xf32> to vector<1x16x256xf32>
    tpu.vector_store %arg6[%c0_115, %c0_116, %c0_117], %249 {strides = array<i32>} : memref<1x16x256xf32, #tpu.memory_space<vmem>>, vector<1x16x256xf32>,
    %c0_118 = arith.constant 0 : index
    %c0_119 = arith.constant 0 : index
    %c0_120 = arith.constant 0 : index
    %250 = vector.load %arg7[%c0_118, %c0_119, %c0_120] : memref<1x16x32xf32, #tpu.memory_space<vmem>>, vector<1x16x32xf32>
    %251 = vector.shape_cast %250 : vector<1x16x32xf32> to vector<16x32xf32>
    %252 = vector.shape_cast %243 : vector<16x32xf32> to vector<1x16x32xf32>
    tpu.vector_store %arg7[%c0_118, %c0_119, %c0_120], %252 {strides = array<i32>} : memref<1x16x32xf32, #tpu.memory_space<vmem>>, vector<1x16x32xf32>,
    return
  }
  func.func @transform_0(%arg0: i32) -> (i32, i32) {
    %c0_i32 = arith.constant 0 : i32
    %c0_i32_0 = arith.constant 0 : i32
    %c0_i32_1 = arith.constant 0 : i32
    return %c0_i32, %c0_i32_0 : i32, i32
  }
  func.func @transform_1(%arg0: i32) -> (i32, i32, i32, i32) {
    %c0_i32 = arith.constant 0 : i32
    %c0_i32_0 = arith.constant 0 : i32
    %c0_i32_1 = arith.constant 0 : i32
    %c0_i32_2 = arith.constant 0 : i32
    return %arg0, %c0_i32, %c0_i32_0, %c0_i32_1 : i32, i32, i32, i32
  }
  func.func @transform_2(%arg0: i32) -> (i32, i32, i32) {
    %c0_i32 = arith.constant 0 : i32
    %c0_i32_0 = arith.constant 0 : i32
    %c0_i32_1 = arith.constant 0 : i32
    return %arg0, %c0_i32, %c0_i32_0 : i32, i32, i32
  }
  func.func @transform_3(%arg0: i32) -> (i32, i32, i32) {
    %c0_i32 = arith.constant 0 : i32
    %c0_i32_0 = arith.constant 0 : i32
    %c0_i32_1 = arith.constant 0 : i32
    return %arg0, %c0_i32, %c0_i32_0 : i32, i32, i32
  }
  func.func @transform_4(%arg0: i32) -> (i32, i32, i32, i32) {
    %c0_i32 = arith.constant 0 : i32
    %c0_i32_0 = arith.constant 0 : i32
    %c0_i32_1 = arith.constant 0 : i32
    %c0_i32_2 = arith.constant 0 : i32
    return %arg0, %c0_i32, %c0_i32_0, %c0_i32_1 : i32, i32, i32, i32
  }
  func.func @transform_5(%arg0: i32) -> (i32, i32, i32) {
    %c0_i32 = arith.constant 0 : i32
    %c0_i32_0 = arith.constant 0 : i32
    %c0_i32_1 = arith.constant 0 : i32
    return %arg0, %c0_i32, %c0_i32_0 : i32, i32, i32
  }
  func.func @transform_6(%arg0: i32) -> (i32, i32, i32) {
    %c0_i32 = arith.constant 0 : i32
    %c0_i32_0 = arith.constant 0 : i32
    %c0_i32_1 = arith.constant 0 : i32
    return %arg0, %c0_i32, %c0_i32_0 : i32, i32, i32
  }
}

</mosaic_0001>

<bundles_post_ra>
// kernel: tpu_custom_call.1
= control target key start
LH: loop header
LB: loop body
LE: loop exit
PB: predicated region body
PF: predicated region fallthrough
CT: control target
= control target key end

     0   :  { %s3141_s0 = inlined_call_operand.vmem [shape: f32[32,16], index: 0, kind: input, shape index: {}]   ;;  %s3142_s1 = inlined_call_operand.hbm [shape: f32[2,8,16,128], index: 1, kind: input, shape index: {}]   ;;  %s3143_s2 = inlined_call_operand.vmem [shape: f32[2,16,32], index: 2, kind: input, shape index: {}]   ;;  %s3144_s3 = inlined_call_operand.hbm [shape: f32[2,16,32], index: 3, kind: input, shape index: {}]   ;;  %s3145_s4 = inlined_call_operand.hbm [shape: f32[2,16,32,128], index: 4, kind: input, shape index: {}]   ;;  %s3146_s5 = inlined_call_operand.hbm [shape: f32[2,16,256], index: 5, kind: output, shape index: {0}]   ;;  %s3147_s6 = inlined_call_operand.hbm [shape: f32[2,16,32], index: 6, kind: output, shape index: {1}]  }
   0x1   :  { %3156 = sst [smem:[#allocation19_spill]] %s3144_s3 }
   0x2   :  { %12 = vsyncpa [#allocation3], 0 }
   0x3   :  { %14 = vsyncpa [#allocation3 + $0x1], 0 }
   0x4   :  { %15 = vsyncpa [#allocation6], 0 }
   0x5   :  { %17 = vsyncpa [#allocation6 + $0x1], 0 }
   0x6   :  { %18 = vsyncpa [#allocation4], 0 }
   0x7   :  { %20 = vsyncpa [#allocation4 + $0x1], 0 }
   0x8   :  { %21 = vsyncpa [#allocation10], 0 }
   0x9   :  { %23 = vsyncpa [#allocation10 + $0x1], 0  ;;  %s2471_s21 = smov 0   ;;  %s2473_s22 = smov 0  }
   0xa   :  { %s2475_s23 = smov 0   ;;  %s2477_s24 = smov 0  }
   0xb LB: > { %3157 = sst [smem:[#allocation15_spill]] %s2419_s23  ;;  %s2492_s25 = sadd.s32 4294967295, %s2423_s24   ;;  %s2423_s24 = sphi %s2477_s24, %s3170_s24   ;;  %s2419_s23 = sphi %s2475_s23, %s3172_s23   ;;  %s2415_s22 = sphi %s2473_s22, %s3174_s22   ;;  %s2411_s21 = sphi %s2471_s21, %s3173_s21  }
   0xc   : > { %s1894_s26 = sadd.s32 4294967294, %s2423_s24   ;;  %s2496_s27 = sadd.s32 1, %s2423_s24  }
   0xd   : > { %3158 = sst [smem:[#allocation16_spill]] %s2496_s27  ;;  %s57_s28 = sadd.s32 1, %s2419_s23 }
   0xe   : > { %s54_s29 = ssub.s32 %s2423_s24, %s2496_s27  ;;  %p64_p0 = scmp.ne.s32.totalorder %s2419_s23, %s2415_s22 }
   0xf   : > { %p55_p1 = scmp.eq.s32.totalorder %s54_s29, 0  ;;  %p65_p2 = scmp.eq.s32.totalorder %s2423_s24, 0 }
  0x10   : > { %p70_p3 = scmp.ne.s32.totalorder %s2415_s22, %s2411_s21  ;;  %p71_p4 = scmp.eq.s32.totalorder %s2492_s25, 0 }
  0x11   : > { %s2508_s30 = scalar_select %p55_p1, %s2419_s23, %s57_s28  }
  0x12   : > { %p66_p5 = por %p65_p2, %p64_p0  ;;  %p2510_p6 = por %p71_p4, %p70_p3 }
  0x13   : > { %3159 = sst [smem:[#allocation17_spill]] %s2508_s30  ;;  %p172_p7 = scmp.eq.s32.totalorder %s2492_s25, 1 }
  0x14   : > { %p178_p8 = scmp.eq.s32.totalorder %s1894_s26, 1  ;;  %p1896_p9 = scmp.ge.s32.totalorder %s2423_s24, 2 }
  0x15   : > { %p2093_p10 = scmp.lt.s32.totalorder %s2423_s24, 2  ;;  %p2517_p11 = por %p172_p7, %p64_p0 }
  0x16   : > { %p2521_p12 = por %p178_p8, %p70_p3  ;;  %s2526_s10 = sand.u32 1, %s2419_s23  }
  0x17   : > { %p2528_p13 = pnand %p2093_p10, %p66_p5  ;;  %s257_s12 = sand.u32 1, %s2423_s24  }
  0x18   : > { %s3162_s9 = scalar_select %p2521_p12, 1, 0 }
  0x19   : > { %s1900_s13 = sshll.u32 %s2526_s10, 4  ;;  %s2061_s14 = sshll.u32 %s2423_s24, 4 }
  0x1a   : > { %3163 = sst [smem:[#allocation18_spill]] %s3162_s9  ;;  %s261_s18 = scalar_lea.vmem [#allocation5], %s1900_s13 }
  0x1b   : > { %s3165_s3 = sld [smem:[#allocation19_spill]]  ;;  %s269_s19 = sshll.u32 %s261_s18, 4  ;;  %s270_s19 = int_to_ptr.vmem [resolvable:$true] %s269_s19 }
  0x1c   : > { %p1906_p0 = scmp.ge.s32.totalorder %s2423_s24, 1  ;;  %s2539_s26 = scalar_lea.sflag [#allocation6], %s257_s12 }
  0x1d   : > { %p2235_p2 = pneg %p2528_p13 }
  0x21   : > { %s266_s17 = scalar_lea.hbm %s3165_s3, %s2061_s14  ;;  %s2238_s13 = scalar_lea.hbm %s3165_s3, 32 }
  0x22   : > { %s267_s20 = sshll.u32 %s266_s17, 4  ;;  %s268_s20 = int_to_ptr.hbm [resolvable:$true] %s267_s20 }
  0x23   : > { %s2231_s28 = sshra.s32 %s268_s20, 4  ;;  %s2232_s28 = int_to_ptr.hbm [resolvable:$true] %s2231_s28 }
  0x24   : > { %s2233_s29 = scalar_lea.hbm %s2232_s28, 16  ;;  %p2239_p5 = scmp.lt.s32.totalorder %s2232_s28, %s3165_s3 }
  0x25   : > { %p2234_p1 = scmp.ne.s32.totalorder %s2232_s28, %s2233_s29  ;;  %p2240_p7 = scmp.lt.s32.totalorder %s2238_s13, %s2233_s29 }
  0x27   : > { %p2236_p3 = pnand %p2235_p2, %p2234_p1  ;;  %p2241_p8 = por %p2240_p7, %p2239_p5 }
  0x29   : > { %p2237_p4 = pneg %p2236_p3 }
  0x2b   : > { %p2242_p10 = pnand %p2241_p8, %p2237_p4 }
  0x2d   : > { %2245 = shalt.err (!%p2242_p10)
}
  0x2e   : > { %s3149_s12 = smov 128   ;;  %s3151_s18 = smov 8  }
  0x2f   : > { %2082 = dma.hbm_to_vmem [thread:$0]  (!%p2528_p13), %s268_s20, 256, %s270_s19, %s2539_s26, %s3149_s12, %s3149_s12, %s3151_s18  }
  0x30   : > { %p299_p1 = scmp.lt.s32.totalorder %s2423_s24, 3  ;;  %s1897_s28 = sshll.u32 %s2526_s10, 7 }
  0x31   : > { %s2060_s29 = sshll.u32 %s2423_s24, 7  ;;  %s231_s17 = scalar_lea.vmem [#allocation2], %s1897_s28 }
  0x32   : > { %p2563_p3 = pnand %p1906_p0, %p299_p1  ;;  %s236_s16 = scalar_lea.hbm %s3142_s1, %s2060_s29 }
  0x33   : > { %s239_s3 = sshll.u32 %s231_s17, 4  ;;  %s237_s30 = sshll.u32 %s236_s16, 4  ;;  %s240_s3 = int_to_ptr.vmem [resolvable:$true] %s239_s3  ;;  %s238_s30 = int_to_ptr.hbm [resolvable:$true] %s237_s30 }
  0x34   : > { %s1903_s23 = sshll.u32 %s2526_s10, 9  ;;  %s228_s19 = scalar_lea.sflag [#allocation3], %s2526_s10 }
  0x35   : > { %s2261_s20 = sshra.s32 %s238_s30, 4  ;;  %s2268_s14 = scalar_lea.hbm %s3142_s1, 256  ;;  %s2262_s20 = int_to_ptr.hbm [resolvable:$true] %s2261_s20 }
  0x36   : > { %s2263_s12 = scalar_lea.hbm %s2262_s20, 128  ;;  %p2269_p7 = scmp.lt.s32.totalorder %s2262_s20, %s3142_s1 }
  0x37   : > { %p2264_p4 = scmp.ne.s32.totalorder %s2262_s20, %s2263_s12  ;;  %p2270_p8 = scmp.lt.s32.totalorder %s2268_s14, %s2263_s12 }
  0x39   : > { %p2266_p0 = pnand %p2264_p4, %p2235_p2  ;;  %p2271_p10 = por %p2270_p8, %p2269_p7 }
  0x3b   : > { %p2267_p5 = pneg %p2266_p0 }
  0x3d   : > { %p2272_p1 = pnand %p2271_p10, %p2267_p5 }
  0x3f   : > { %2275 = shalt.err (!%p2272_p1)
}
  0x40   : > { %s3167_s10 = smov 8   ;;  %s3168_s13 = smov 128  }
  0x41   : > { %2079 = dma.hbm_to_vmem [thread:$0]  (!%p2528_p13), %s238_s30, 2048, %s240_s3, %s228_s19, %s3168_s13, %s3168_s13, %s3167_s10  }
  0x42   : > { %s2062_s16 = sshll.u32 %s2423_s24, 9  ;;  %s283_s9 = scalar_lea.vmem [#allocation7], %s1903_s23 }
  0x43   : > { %s288_s18 = scalar_lea.hbm %s3145_s4, %s2062_s16  ;;  %s291_s29 = sshll.u32 %s283_s9, 4  ;;  %s292_s29 = int_to_ptr.vmem [resolvable:$true] %s291_s29 }
  0x44   : > { %s289_s20 = sshll.u32 %s288_s18, 4  ;;  %s2298_s30 = scalar_lea.hbm %s3145_s4, 1024  ;;  %s290_s20 = int_to_ptr.hbm [resolvable:$true] %s289_s20 }
  0x45   : > { %s2291_s12 = sshra.s32 %s290_s20, 4  ;;  %s2292_s12 = int_to_ptr.hbm [resolvable:$true] %s2291_s12 }
  0x46   : > { %s2293_s14 = scalar_lea.hbm %s2292_s12, 512  ;;  %p2299_p7 = scmp.lt.s32.totalorder %s2292_s12, %s3145_s4 }
  0x47   : > { %p2294_p4 = scmp.ne.s32.totalorder %s2292_s12, %s2293_s14  ;;  %p2300_p8 = scmp.lt.s32.totalorder %s2298_s30, %s2293_s14 }
  0x49   : > { %p2296_p0 = pnand %p2294_p4, %p2235_p2  ;;  %p2301_p10 = por %p2300_p8, %p2299_p7 }
  0x4b   : > { %p2297_p5 = pneg %p2296_p0 }
  0x4d   : > { %p2302_p1 = pnand %p2301_p10, %p2297_p5 }
  0x4f   : > { %2305 = shalt.err (!%p2302_p1)
}
  0x50   : > { %2085 = dma.hbm_to_vmem [thread:$0]  (!%p2528_p13), %s290_s20, 8192, %s292_s29, %s2539_s26, %s3168_s13, %s3168_s13, %s3167_s10  }
  0x51   : > { %303 = sbr.rel (%p2563_p3) target bundleno = 6084 (0x17c4), region = 40  ;;  %s2608_s23 = sand.u32 (!%p2563_p3), 1, %s2415_s22  }
  0x52   : > { %s1907_s9 = sshll.u32 (!%p2563_p3), %s2608_s23, 7  ;;  %s306_s16 = scalar_lea.sflag (!%p2563_p3), [#allocation3], %s2608_s23 }
  0x53   : > { %s2612_s27 = scalar_lea.vmem (!%p2563_p3), [#allocation2], %s1907_s9 }
  0x56   : > { %2394 = dma.done.wait (%p2510_p6), %s306_s16, 2048  }
  0x57   : > { %2396 = vsyncadd (%p2510_p6), %s306_s16, 4294965248  ;;  %s315_s11 = sand.u32 1, %s2492_s25   ;;  %s1908_s26 = sshll.u32 %s2608_s23, 4 }
  0x58   : > { %s316_s15 = scalar_lea.sflag [#allocation6], %s315_s11  ;;  %s2622_s10 = scalar_lea.vmem [#allocation5], %s1908_s26 }
  0x59   : > { %2398 = dma.done.wait (%p2510_p6), %s316_s15, 8448  }
  0x5a   : > { %2400 = vsyncadd (%p2510_p6), %s316_s15, 4294958848  ;;  %p379_p13 = scmp.lt.s32.totalorder %s2492_s25, 1  ;;  %s1909_s18 = sshll.u32 %s2608_s23, 9  ;;  %v2637_v2 = vld [vmem:[%s3141_s0] sm:$0xff]  ;;  %vm397_vm0 = vcmask 130048   ;;  %v2649_v6 = vld [vmem:[%s3141_s0 + $0x8] sm:$0xff]  ;;  %v388_v21 = vlaneseq }
  0x5b   : > { %s2639_s7 = scalar_lea.vmem [#allocation7], %s1909_s18  ;;  %v2656_v7 = vld [vmem:[%s3141_s0 + $0x10] sm:$0xff]  ;;  %v2663_v8 = vld [vmem:[%s3141_s0 + $0x18] sm:$0xff]  ;;  %s2427_s15 = smov 32   ;;  %vm445_vm1 = vcmask 261120   ;;  %v439_v24 = vld [vmem:[%s2612_s27] sm:$0xff] }
  0x5c   : > { %s380_s13 = scalar_select %p379_p13, %s2492_s25, 1  ;;  %v444_v3 = vld [vmem:[%s2639_s7 + $0x18] sm:$0xff]  ;;  %v443_v4 = vld [vmem:[%s2639_s7 + $0x10] sm:$0xff]  ;;  %v442_v5 = vld [vmem:[%s2639_s7 + $0x8] sm:$0xff]  ;;  %v389_v23 = vand.u32 127, %v388_v21  ;;  %v2428_v32 = vmov 1.0  }
  0x5d   : > { %464 = vmatpush.msra.mxu1 %v444_v3  ;;  %v441_v9 = vld [vmem:[%s2639_s7] sm:$0xff]  ;;  %v1923_v10 = vld [vmem:[%s2639_s7 + $0x38] sm:$0xff]  ;;  %v1922_v11 = vld [vmem:[%s2639_s7 + $0x30] sm:$0xff]  ;;  %v2429_v38 = vmov 0.0   ;;  %vm1669_vm3 = vcmask 523264   ;;  %vm1672_vm4 = vcmask 785408  }
  0x5e   : > { %s2063_s29 = sshll.u32 %s380_s13, 4  ;;  %500 = vmatpush.msra.mxu2 %v1923_v10  ;;  %v1921_v12 = vld [vmem:[%s2639_s7 + $0x28] sm:$0xff]  ;;  %v1920_v13 = vld [vmem:[%s2639_s7 + $0x20] sm:$0xff]  ;;  %vm390_vm2 = vcmp.lt.s32.totalorder %v389_v23, 96  ;;  %v1935_v63 = vld [vmem:[%s2639_s7 + $0x58] sm:$0xff]  ;;  %s378_s19 = scalar_lea.vmem [#allocation9], %s1908_s26 }
  0x5f   : > { %s383_s14 = scalar_lea.vmem %s3143_s2, %s2063_s29  ;;  %465 = vmatpush.msra.mxu1 %v443_v4  ;;  %v396_v14 = vld [vmem:[%s2622_s10 + $0x8] sm:$0xff]  ;;  %v395_v15 = vld [vmem:[%s2622_s10] sm:$0xff]  ;;  %v2682_v33 = vsel %vm390_vm2, 0.5, %v2428_v32  ;;  %v2687_v39 = vsel %vm390_vm2, 0.5, %v2429_v38  ;;  %s2430_s10 = smov 64  }
  0x60   : > { %v394_v0 = vld [vmem:[%s383_s14 + $0x8] sm:$0xff]  ;;  %v393_v1 = vld [vmem:[%s383_s14] sm:$0xff]  ;;  %501 = vmatpush.msra.mxu2 %v1922_v11  ;;  %525 = vrot.lane.b32.xlu1 %v396_v14, %s2427_s15  ;;  %s2065_s17 = sshll.u32 %s2492_s25, 4  ;;  %s1730_s26 = sshll.u32 %s378_s19, 4  ;;  %s1731_s26 = int_to_ptr.vmem [resolvable:$true] %s1730_s26 }
  0x61   : > { %424 = vmatpush.msra.mxu0 %v394_v0  ;;  %466 = vmatpush.msra.mxu1 %v442_v5  ;;  %v440_v25 = vld [vmem:[%s2612_s27 + $0x8] sm:$0xff]  ;;  %v1934_v0 = vld [vmem:[%s2639_s7 + $0x50] sm:$0xff]  ;;  %v1932_v4 = vld [vmem:[%s2639_s7 + $0x40] sm:$0xff]  ;;  %s1729_s11 = scalar_lea.hbm %s3147_s6, %s2065_s17  ;;  %s2341_s12 = scalar_lea.hbm %s3147_s6, 32 }
  0x62   : > { %502 = vmatpush.msra.mxu2 %v1921_v12  ;;  %v1941_v5 = vld [vmem:[%s2639_s7 + $0x78] sm:$0xff]  ;;  %v1939_v10 = vld [vmem:[%s2639_s7 + $0x68] sm:$0xff]  ;;  %v1938_v11 = vld [vmem:[%s2639_s7 + $0x60] sm:$0xff] }
  0x63   : > { %425 = vmatpush.msra.mxu0 %v393_v1  ;;  %467 = vmatpush.msra.mxu1 %v441_v9  ;;  %v1933_v1 = vld [vmem:[%s2639_s7 + $0x48] sm:$0xff]  ;;  %v1940_v9 = vld [vmem:[%s2639_s7 + $0x70] sm:$0xff] }
  0x64   : > { %1914 = vmatmul.msk.f32.vlgmr.msra.gmra.mxu0 %vm397_vm0, %v2637_v2  ;;  %503 = vmatpush.msra.mxu2 %v1920_v13 }
  0x65   : > { %626 = vmatpush.msrb.mxu1 %v1935_v63  ;;  %v1957_v63 = vld [vmem:[%s2639_s7 + $0xa8] sm:$0xff] }
  0x66   : > { %662 = vmatpush.msrb.mxu2 %v1941_v5 }
  0x67   : > { %627 = vmatpush.msrb.mxu1 %v1934_v0  ;;  %v1956_v0 = vld [vmem:[%s2639_s7 + $0xa0] sm:$0xff] }
  0x68   : > { %523 = vrot.lane.b32.xlu1 %v395_v15, %s2427_s15  ;;  %663 = vmatpush.msrb.mxu2 %v1940_v9 }
  0x69   : > { %628 = vmatpush.msrb.mxu1 %v1933_v1 }
  0x6a   : > { %664 = vmatpush.msrb.mxu2 %v1939_v10 }
  0x6b   : > { %629 = vmatpush.msrb.mxu1 %v1932_v4 }
  0x6c   : > { %1915 = vmatmul.msk.f32.gmra.mxu0 %vm397_vm0, %v2649_v6  ;;  %665 = vmatpush.msrb.mxu2 %v1938_v11  ;;  %v1948_v11 = vld [vmem:[%s2612_s27 + $0x20] sm:$0xff] }
  0x74   : > { %1916 = vmatmul.msk.f32.gmra.mxu0 %vm397_vm0, %v2656_v7 }
  0x7c   : > { %1917 = vmatmul.msk.f32.gmra.mxu0 %vm397_vm0, %v2663_v8 }
  0xd2   : > { %v526_v48 = vpop.permute.xlu1 %525 }
  0xda   : > { %v524_v52 = vpop.permute.xlu1 %523 }
  0xe1   : > { %v427_v16 = vpop.f32.mrf.mxu0 }
  0xe2   : > { %1918 = vmatmul.msk.f32.vlgmr.msra.gmra.mxu1 %vm445_vm1, %v427_v16 }
  0xe9   : > { %v430_v17 = vpop.f32.mrf.mxu0 }
  0xea   : > { %1919 = vmatmul.msk.f32.gmra.mxu1 %vm445_vm1, %v430_v17  ;;  %v1930_v17 = vld [vmem:[%s2612_s27 + $0x10] sm:$0xff] }
  0xf1   : > { %v433_v18 = vpop.f32.mrf.mxu0 }
  0xf2   : > { %1924 = vmatmul.msk.f32.vlgmr.msra.gmra.mxu2 %vm445_vm1, %v433_v18 }
  0xf9   : > { %v436_v19 = vpop.f32.mrf.mxu0 }
  0xfa   : > { %1925 = vmatmul.msk.f32.gmra.mxu2 %vm445_vm1, %v436_v19 }
 0x15f   : > { %v469_v20 = vpop.f32.mrf.mxu1 }
 0x160   : > { %v475_v27 = vadd.f32 %v469_v20, %v439_v24 }
 0x167   : > { %v472_v26 = vpop.f32.mrf.mxu1 }
 0x168   : > { %v476_v28 = vadd.f32 %v472_v26, %v440_v25 }
 0x175   : > { %v505_v22 = vpop.f32.mrf.mxu2 }
 0x176   : > { %v511_v30 = vadd.f32 %v505_v22, %v475_v27  ;;  %v1931_v22 = vld [vmem:[%s2612_s27 + $0x18] sm:$0xff] }
 0x178   : > { %v513_v35 = vmul.f32 %v511_v30, %v2682_v33 }
 0x17d   : > { %v508_v29 = vpop.f32.mrf.mxu2 }
 0x17e   : > { %v512_v31 = vadd.f32 %v508_v29, %v476_v28 }
 0x180   : > { %v514_v34 = vmul.f32 %v512_v31, %v2682_v33 }
 0x182   : > { %2163 = vtanh.f32 %v514_v34 }
 0x183   : > { %2165 = vtanh.f32 %v513_v35 }
 0x188   : > { %v2164_v36 = vpop.eup %2163 }
 0x189   : > { %v518_v37 = vmul.f32 %v2164_v36, %v2682_v33  ;;  %v2166_v41 = vpop.eup %2165 }
 0x18a   : > { %v517_v42 = vmul.f32 %v2166_v41, %v2682_v33 }
 0x18b   : > { %v520_v40 = vadd.f32 %v518_v37, %v2687_v39 }
 0x18c   : > { %v519_v43 = vadd.f32 %v517_v42, %v2687_v39 }
 0x18d   : > { %535 = vrot.lane.b32.xlu0 %v520_v40, %s2427_s15  ;;  %v530_v49 = vmul.f32 %v526_v48, %v520_v40 }
 0x18e   : > { %v529_v53 = vmul.f32 %v524_v52, %v519_v43 }
 0x195   : > { %533 = vrot.lane.b32.xlu0 %v519_v43, %s2427_s15 }
 0x1ff   : > { %v536_v44 = vpop.permute.xlu0 %535 }
 0x200   : > { %v540_v45 = vmul.f32 %v536_v44, %v520_v40 }
 0x202   : > { %545 = vrot.lane.b32.xlu2 %v540_v45, %s2427_s15 }
 0x207   : > { %v534_v46 = vpop.permute.xlu0 %533 }
 0x208   : > { %v539_v47 = vmul.f32 %v534_v46, %v519_v43 }
 0x20a   : > { %543 = vrot.lane.b32.xlu2 %v539_v47, %s2427_s15 }
 0x25c   : > { %v546_v50 = vpop.permute.xlu2 %545 }
 0x25d   : > { %v2696_v51 = vadd.f32 %v546_v50, %v530_v49 }
 0x25f   : > { %2167 = vtanh.f32 %v2696_v51 }
 0x264   : > { %v544_v54 = vpop.permute.xlu2 %543 }
 0x265   : > { %v2168_v55 = vpop.eup %2167  ;;  %v2699_v56 = vadd.f32 %v544_v54, %v529_v53  ;;  %v1952_v54 = vld [vmem:[%s2639_s7 + $0x90] sm:$0xff] }
 0x266   : > { %557 = vrot.lane.b32.xlu0 %v2168_v55, %s2427_s15 }
 0x267   : > { %2169 = vtanh.f32 %v2699_v56 }
 0x26d   : > { %v2170_v57 = vpop.eup %2169 }
 0x26e   : > { %555 = vrot.lane.b32.xlu1 %v2170_v57, %s2427_s15 }
 0x2d8   : > { %v558_v58 = vpop.permute.xlu0 %557 }
 0x2d9   : > { %v562_v59 = vmul.f32 %v558_v58, %v520_v40 }
 0x2db   : > { %567 = vrot.lane.b32.xlu2 %v562_v59, %s2430_s10  ;;  %v1950_v59 = vld [vmem:[%s2639_s7 + $0x80] sm:$0xff] }
 0x2e0   : > { %v556_v60 = vpop.permute.xlu1 %555 }
 0x2e1   : > { %v561_v61 = vmul.f32 %v556_v60, %v519_v43  ;;  %v1959_v60 = vld [vmem:[%s2639_s7 + $0xb8] sm:$0xff] }
 0x2e2   : > { %816 = vmatpush.msra.mxu1 %v1959_v60 }
 0x2e3   : > { %565 = vrot.lane.b32.xlu0 %v561_v61, %s2430_s10  ;;  %v1958_v61 = vld [vmem:[%s2639_s7 + $0xb0] sm:$0xff] }
 0x2e4   : > { %817 = vmatpush.msra.mxu1 %v1958_v61 }
 0x2e6   : > { %818 = vmatpush.msra.mxu1 %v1957_v63 }
 0x2e8   : > { %819 = vmatpush.msra.mxu1 %v1956_v0 }
 0x335   : > { %v2706_v62 = vpop.permute.xlu2 %567 }
 0x336   : > { %585 = vmatpush.msra.mxu3 %v2706_v62 }
 0x355   : > { %v2712_v3 = vpop.permute.xlu0 %565 }
 0x356   : > { %586 = vmatpush.msra.mxu3 %v2712_v3 }
 0x357   : > { %1926 = vmatmul.msk.f32.vlgmr.msra.gmra.mxu3 %vm397_vm0, %v2637_v2 }
 0x35f   : > { %1927 = vmatmul.msk.f32.gmra.mxu3 %vm397_vm0, %v2649_v6 }
 0x367   : > { %1928 = vmatmul.msk.f32.gmra.mxu3 %vm397_vm0, %v2656_v7 }
 0x36f   : > { %1929 = vmatmul.msk.f32.gmra.mxu3 %vm397_vm0, %v2663_v8 }
 0x3da   : > { %v588_v12 = vpop.f32.mrf.mxu3 }
 0x3db   : > { %1936 = vmatmul.msk.f32.vlgmr.msrb.gmra.mxu1 %vm445_vm1, %v588_v12 }
 0x3e2   : > { %v591_v13 = vpop.f32.mrf.mxu3 }
 0x3e3   : > { %1937 = vmatmul.msk.f32.gmra.mxu1 %vm445_vm1, %v591_v13 }
 0x3ea   : > { %v594_v14 = vpop.f32.mrf.mxu3 }
 0x3eb   : > { %1942 = vmatmul.msk.f32.vlgmr.msrb.gmra.mxu2 %vm445_vm1, %v594_v14 }
 0x3f2   : > { %v597_v15 = vpop.f32.mrf.mxu3 }
 0x3f3   : > { %1943 = vmatmul.msk.f32.gmra.mxu2 %vm445_vm1, %v597_v15 }
 0x458   : > { %v631_v16 = vpop.f32.mrf.mxu1 }
 0x459   : > { %v637_v18 = vadd.f32 %v1930_v17, %v631_v16  ;;  %v1949_v16 = vld [vmem:[%s2612_s27 + $0x28] sm:$0xff] }
 0x460   : > { %v634_v23 = vpop.f32.mrf.mxu1 }
 0x461   : > { %v638_v24 = vadd.f32 %v1931_v22, %v634_v23 }
 0x46e   : > { %v667_v19 = vpop.f32.mrf.mxu2 }
 0x46f   : > { %v673_v20 = vadd.f32 %v667_v19, %v637_v18 }
 0x471   : > { %v675_v21 = vmul.f32 %v673_v20, %v2682_v33 }
 0x473   : > { %2171 = vtanh.f32 %v675_v21 }
 0x476   : > { %v670_v25 = vpop.f32.mrf.mxu2 }
 0x477   : > { %v674_v26 = vadd.f32 %v670_v25, %v638_v24 }
 0x479   : > { %v2172_v27 = vpop.eup %2171  ;;  %v676_v28 = vmul.f32 %v674_v26, %v2682_v33 }
 0x47a   : > { %v679_v29 = vmul.f32 %v2172_v27, %v2682_v33 }
 0x47b   : > { %2173 = vtanh.f32 %v676_v28 }
 0x47c   : > { %v681_v30 = vadd.f32 %v679_v29, %v2687_v39 }
 0x47e   : > { %687 = vrot.lane.b32.xlu2 %v681_v30, %s2427_s15  ;;  %v683_v40 = vmul.f32 %v681_v30, %v2699_v56  ;;  %v1951_v56 = vld [vmem:[%s2639_s7 + $0x88] sm:$0xff] }
 0x481   : > { %v2174_v31 = vpop.eup %2173 }
 0x482   : > { %v680_v32 = vmul.f32 %v2174_v31, %v2682_v33 }
 0x484   : > { %v682_v34 = vadd.f32 %v680_v32, %v2687_v39 }
 0x486   : > { %689 = vrot.lane.b32.xlu1 %v682_v34, %s2427_s15  ;;  %v684_v44 = vmul.f32 %v682_v34, %v2696_v51  ;;  %v1953_v51 = vld [vmem:[%s2639_s7 + $0x98] sm:$0xff] }
 0x487   : > { %780 = vmatpush.msrb.mxu3 %v1953_v51 }
 0x489   : > { %781 = vmatpush.msrb.mxu3 %v1952_v54 }
 0x48b   : > { %782 = vmatpush.msrb.mxu3 %v1951_v56  ;;  %v1977_v56 = vld [vmem:[%s2639_s7 + $0xf8] sm:$0xff] }
 0x48c   : > { %970 = vmatpush.msrb.mxu1 %v1977_v56  ;;  %v1993_v56 = vld [vmem:[%s2639_s7 + $0x128] sm:$0xff] }
 0x48d   : > { %783 = vmatpush.msrb.mxu3 %v1950_v59  ;;  %v1974_v59 = vld [vmem:[%s2639_s7 + $0xe0] sm:$0xff] }
 0x4d8   : > { %v688_v35 = vpop.permute.xlu2 %687 }
 0x4d9   : > { %v693_v36 = vmul.f32 %v688_v35, %v681_v30 }
 0x4db   : > { %697 = vrot.lane.b32.xlu1 %v693_v36, %s2427_s15 }
 0x4f8   : > { %v690_v37 = vpop.permute.xlu1 %689 }
 0x4f9   : > { %v694_v38 = vmul.f32 %v690_v37, %v682_v34 }
 0x4fb   : > { %699 = vrot.lane.b32.xlu0 %v694_v38, %s2427_s15 }
 0x54d   : > { %v698_v41 = vpop.permute.xlu1 %697 }
 0x54e   : > { %v2745_v42 = vadd.f32 %v698_v41, %v683_v40 }
 0x550   : > { %2175 = vtanh.f32 %v2745_v42 }
 0x556   : > { %v2176_v43 = vpop.eup %2175 }
 0x557   : > { %709 = vrot.lane.b32.xlu0 %v2176_v43, %s2427_s15 }
 0x56d   : > { %v700_v45 = vpop.permute.xlu0 %699 }
 0x56e   : > { %v2750_v46 = vadd.f32 %v700_v45, %v684_v44 }
 0x570   : > { %2177 = vtanh.f32 %v2750_v46 }
 0x576   : > { %v2178_v47 = vpop.eup %2177 }
 0x577   : > { %711 = vrot.lane.b32.xlu2 %v2178_v47, %s2427_s15  ;;  %v1971_v47 = vld [vmem:[%s2639_s7 + $0xd8] sm:$0xff] }
 0x578   : > { %934 = vmatpush.msra.mxu3 %v1971_v47 }
 0x5c9   : > { %v710_v48 = vpop.permute.xlu0 %709 }
 0x5ca   : > { %v2754_v50 = vmul.f32 %v710_v48, %v681_v30  ;;  %v1970_v48 = vld [vmem:[%s2639_s7 + $0xd0] sm:$0xff] }
 0x5cb   : > { %935 = vmatpush.msra.mxu3 %v1970_v48  ;;  %v1987_v48 = vld [vmem:[%s2639_s7 + $0x108] sm:$0xff] }
 0x5d1   : > { %v712_v49 = vpop.permute.xlu2 %711 }
 0x5d2   : > { %v2756_v52 = vmul.f32 %v712_v49, %v682_v34 }
 0x5d4   : > { %v2138_v53 = vpack.i.bf16 %v2754_v50, %v2756_v52 }
 0x5d6   : > { %2139 = vrot.lane.b32.xlu1 %v2138_v53, %s2430_s10  ;;  %v1969_v53 = vld [vmem:[%s2639_s7 + $0xc8] sm:$0xff] }
 0x5d7   : > { %936 = vmatpush.msra.mxu3 %v1969_v53 }
 0x648   : > { %v2140_v55 = vpop.permute.xlu1 %2139 }
 0x649   : > { %v2141_v57 = vunpack.i.l.bf16 %v2140_v55  ;;  %v2142_v58 = vunpack.i.h.bf16 %v2140_v55  ;;  %v1968_v55 = vld [vmem:[%s2639_s7 + $0xc0] sm:$0xff] }
 0x64a   : > { %937 = vmatpush.msra.mxu3 %v1968_v55  ;;  %v1994_v55 = vld [vmem:[%s2639_s7 + $0x130] sm:$0xff] }
 0x64b   : > { %739 = vmatpush.msrb.mxu0 %v2141_v57  ;;  %v1976_v57 = vld [vmem:[%s2639_s7 + $0xf0] sm:$0xff] }
 0x64c   : > { %971 = vmatpush.msrb.mxu1 %v1976_v57  ;;  %v1992_v57 = vld [vmem:[%s2639_s7 + $0x120] sm:$0xff] }
 0x64d   : > { %740 = vmatpush.msrb.mxu0 %v2142_v58  ;;  %v1975_v58 = vld [vmem:[%s2639_s7 + $0xe8] sm:$0xff] }
 0x64e   : > { %1944 = vmatmul.msk.f32.vlgmr.msrb.gmra.mxu0 %vm397_vm0, %v2637_v2  ;;  %972 = vmatpush.msrb.mxu1 %v1975_v58 }
 0x650   : > { %973 = vmatpush.msrb.mxu1 %v1974_v59 }
 0x656   : > { %1945 = vmatmul.msk.f32.gmra.mxu0 %vm397_vm0, %v2649_v6 }
 0x65e   : > { %1946 = vmatmul.msk.f32.gmra.mxu0 %vm397_vm0, %v2656_v7 }
 0x666   : > { %1947 = vmatmul.msk.f32.gmra.mxu0 %vm397_vm0, %v2663_v8 }
 0x6cb   : > { %v742_v1 = vpop.f32.mrf.mxu0 }
 0x6cc   : > { %1954 = vmatmul.msk.f32.vlgmr.msrb.gmra.mxu3 %vm445_vm1, %v742_v1 }
 0x6d3   : > { %v745_v4 = vpop.f32.mrf.mxu0 }
 0x6d4   : > { %1955 = vmatmul.msk.f32.gmra.mxu3 %vm445_vm1, %v745_v4  ;;  %v1966_v4 = vld [vmem:[%s2612_s27 + $0x30] sm:$0xff] }
 0x6db   : > { %v748_v5 = vpop.f32.mrf.mxu0 }
 0x6dc   : > { %1960 = vmatmul.msk.f32.vlgmr.msra.gmra.mxu1 %vm445_vm1, %v748_v5 }
 0x6e3   : > { %v751_v9 = vpop.f32.mrf.mxu0 }
 0x6e4   : > { %1961 = vmatmul.msk.f32.gmra.mxu1 %vm445_vm1, %v751_v9 }
 0x74f   : > { %v785_v10 = vpop.f32.mrf.mxu3 }
 0x750   : > { %v791_v12 = vadd.f32 %v1948_v11, %v785_v10 }
 0x757   : > { %v788_v17 = vpop.f32.mrf.mxu3 }
 0x758   : > { %v792_v18 = vadd.f32 %v1949_v16, %v788_v17 }
 0x759   : > { %v821_v13 = vpop.f32.mrf.mxu1 }
 0x75a   : > { %v827_v14 = vadd.f32 %v821_v13, %v791_v12  ;;  %v1967_v12 = vld [vmem:[%s2612_s27 + $0x38] sm:$0xff] }
 0x75c   : > { %v829_v15 = vmul.f32 %v827_v14, %v2682_v33 }
 0x75e   : > { %2179 = vtanh.f32 %v829_v15 }
 0x761   : > { %v824_v19 = vpop.f32.mrf.mxu1 }
 0x762   : > { %v828_v20 = vadd.f32 %v824_v19, %v792_v18 }
 0x764   : > { %v2180_v21 = vpop.eup %2179  ;;  %v830_v22 = vmul.f32 %v828_v20, %v2682_v33 }
 0x765   : > { %v833_v23 = vmul.f32 %v2180_v21, %v2682_v33 }
 0x766   : > { %2181 = vtanh.f32 %v830_v22 }
 0x767   : > { %v835_v24 = vadd.f32 %v833_v23, %v2687_v39 }
 0x769   : > { %841 = vrot.lane.b32.xlu0 %v835_v24, %s2427_s15  ;;  %v837_v32 = vmul.f32 %v835_v24, %v2745_v42 }
 0x76c   : > { %v2182_v25 = vpop.eup %2181 }
 0x76d   : > { %v834_v26 = vmul.f32 %v2182_v25, %v2682_v33 }
 0x76f   : > { %v836_v27 = vadd.f32 %v834_v26, %v2687_v39 }
 0x771   : > { %843 = vrot.lane.b32.xlu2 %v836_v27, %s2427_s15  ;;  %v838_v36 = vmul.f32 %v836_v27, %v2750_v46 }
 0x7cb   : > { %v844_v28 = vpop.permute.xlu2 %843 }
 0x7cc   : > { %v848_v29 = vmul.f32 %v844_v28, %v836_v27 }
 0x7ce   : > { %853 = vrot.lane.b32.xlu1 %v848_v29, %s2427_s15 }
 0x7db   : > { %v842_v30 = vpop.permute.xlu0 %841 }
 0x7dc   : > { %v847_v31 = vmul.f32 %v842_v30, %v835_v24 }
 0x7de   : > { %851 = vrot.lane.b32.xlu2 %v847_v31, %s2427_s15 }
 0x838   : > { %v852_v34 = vpop.permute.xlu2 %851 }
 0x839   : > { %v2794_v35 = vadd.f32 %v852_v34, %v837_v32 }
 0x83b   : > { %2183 = vtanh.f32 %v2794_v35 }
 0x840   : > { %v854_v37 = vpop.permute.xlu1 %853 }
 0x841   : > { %v2184_v38 = vpop.eup %2183  ;;  %v2798_v40 = vadd.f32 %v854_v37, %v838_v36 }
 0x842   : > { %863 = vrot.lane.b32.xlu1 %v2184_v38, %s2427_s15 }
 0x843   : > { %2185 = vtanh.f32 %v2798_v40 }
 0x849   : > { %v2186_v41 = vpop.eup %2185 }
 0x84a   : > { %865 = vrot.lane.b32.xlu0 %v2186_v41, %s2427_s15 }
 0x8b4   : > { %v864_v42 = vpop.permute.xlu1 %863 }
 0x8b5   : > { %v2803_v44 = vmul.f32 %v864_v42, %v835_v24 }
 0x8bc   : > { %v866_v43 = vpop.permute.xlu0 %865 }
 0x8bd   : > { %v2805_v45 = vmul.f32 %v866_v43, %v836_v27 }
 0x8bf   : > { %v2143_v46 = vpack.i.bf16 %v2803_v44, %v2805_v45 }
 0x8c1   : > { %2144 = vrot.lane.b32.xlu2 %v2143_v46, %s2430_s10  ;;  %v1988_v46 = vld [vmem:[%s2639_s7 + $0x110] sm:$0xff] }
 0x91b   : > { %v2145_v49 = vpop.permute.xlu2 %2144 }
 0x91c   : > { %v2146_v51 = vunpack.i.l.bf16 %v2145_v49  ;;  %v2147_v54 = vunpack.i.h.bf16 %v2145_v49 }
 0x91e   : > { %893 = vmatpush.msra.mxu2 %v2146_v51  ;;  %v1986_v51 = vld [vmem:[%s2639_s7 + $0x100] sm:$0xff] }
 0x920   : > { %894 = vmatpush.msra.mxu2 %v2147_v54  ;;  %v1995_v54 = vld [vmem:[%s2639_s7 + $0x138] sm:$0xff] }
 0x921   : > { %1962 = vmatmul.msk.f32.vlgmr.msra.gmra.mxu2 %vm397_vm0, %v2637_v2  ;;  %1124 = vmatpush.msra.mxu1 %v1995_v54  ;;  %v2011_v54 = vld [vmem:[%s2639_s7 + $0x168] sm:$0xff] }
 0x923   : > { %1125 = vmatpush.msra.mxu1 %v1994_v55  ;;  %v2010_v55 = vld [vmem:[%s2639_s7 + $0x160] sm:$0xff] }
 0x925   : > { %1126 = vmatpush.msra.mxu1 %v1993_v56 }
 0x927   : > { %1127 = vmatpush.msra.mxu1 %v1992_v57 }
 0x929   : > { %1963 = vmatmul.msk.f32.gmra.mxu2 %vm397_vm0, %v2649_v6 }
 0x931   : > { %1964 = vmatmul.msk.f32.gmra.mxu2 %vm397_vm0, %v2656_v7 }
 0x939   : > { %1965 = vmatmul.msk.f32.gmra.mxu2 %vm397_vm0, %v2663_v8 }
 0x9a4   : > { %v896_v60 = vpop.f32.mrf.mxu2 }
 0x9a5   : > { %1972 = vmatmul.msk.f32.vlgmr.msra.gmra.mxu3 %vm445_vm1, %v896_v60 }
 0x9ac   : > { %v899_v61 = vpop.f32.mrf.mxu2 }
 0x9ad   : > { %1973 = vmatmul.msk.f32.gmra.mxu3 %vm445_vm1, %v899_v61 }
 0x9b4   : > { %v902_v63 = vpop.f32.mrf.mxu2 }
 0x9b5   : > { %1978 = vmatmul.msk.f32.vlgmr.msrb.gmra.mxu1 %vm445_vm1, %v902_v63 }
 0x9bc   : > { %v905_v0 = vpop.f32.mrf.mxu2 }
 0x9bd   : > { %1979 = vmatmul.msk.f32.gmra.mxu1 %vm445_vm1, %v905_v0  ;;  %v1984_v0 = vld [vmem:[%s2612_s27 + $0x40] sm:$0xff] }
 0xa28   : > { %v939_v1 = vpop.f32.mrf.mxu3 }
 0xa29   : > { %v945_v5 = vadd.f32 %v1966_v4, %v939_v1 }
 0xa30   : > { %v942_v13 = vpop.f32.mrf.mxu3 }
 0xa31   : > { %v946_v14 = vadd.f32 %v1967_v12, %v942_v13 }
 0xa32   : > { %v975_v9 = vpop.f32.mrf.mxu1 }
 0xa33   : > { %v981_v10 = vadd.f32 %v975_v9, %v945_v5 }
 0xa35   : > { %v983_v11 = vmul.f32 %v981_v10, %v2682_v33  ;;  %v1985_v10 = vld [vmem:[%s2612_s27 + $0x48] sm:$0xff] }
 0xa37   : > { %2187 = vtanh.f32 %v983_v11 }
 0xa3a   : > { %v978_v15 = vpop.f32.mrf.mxu1 }
 0xa3b   : > { %v982_v16 = vadd.f32 %v978_v15, %v946_v14 }
 0xa3d   : > { %v2188_v17 = vpop.eup %2187  ;;  %v984_v18 = vmul.f32 %v982_v16, %v2682_v33 }
 0xa3e   : > { %v987_v19 = vmul.f32 %v2188_v17, %v2682_v33 }
 0xa3f   : > { %2189 = vtanh.f32 %v984_v18 }
 0xa40   : > { %v989_v20 = vadd.f32 %v987_v19, %v2687_v39 }
 0xa42   : > { %995 = vrot.lane.b32.xlu1 %v989_v20, %s2427_s15  ;;  %v991_v32 = vmul.f32 %v989_v20, %v2794_v35  ;;  %v1989_v35 = vld [vmem:[%s2639_s7 + $0x118] sm:$0xff] }
 0xa43   : > { %1088 = vmatpush.msrb.mxu3 %v1989_v35  ;;  %v2007_v35 = vld [vmem:[%s2639_s7 + $0x158] sm:$0xff] }
 0xa45   : > { %v2190_v21 = vpop.eup %2189  ;;  %1089 = vmatpush.msrb.mxu3 %v1988_v46  ;;  %v2005_v46 = vld [vmem:[%s2639_s7 + $0x148] sm:$0xff] }
 0xa46   : > { %v988_v22 = vmul.f32 %v2190_v21, %v2682_v33 }
 0xa47   : > { %1090 = vmatpush.msrb.mxu3 %v1987_v48 }
 0xa48   : > { %v990_v23 = vadd.f32 %v988_v22, %v2687_v39 }
 0xa49   : > { %1091 = vmatpush.msrb.mxu3 %v1986_v51  ;;  %v2012_v51 = vld [vmem:[%s2639_s7 + $0x170] sm:$0xff] }
 0xa4a   : > { %997 = vrot.lane.b32.xlu0 %v990_v23, %s2427_s15  ;;  %v992_v28 = vmul.f32 %v990_v23, %v2798_v40 }
 0xa4b   : > { %1242 = vmatpush.msra.mxu3 %v2007_v35  ;;  %v2024_v35 = vld [vmem:[%s2639_s7 + $0x190] sm:$0xff] }
 0xab4   : > { %v996_v24 = vpop.permute.xlu1 %995 }
 0xab5   : > { %v1001_v25 = vmul.f32 %v996_v24, %v989_v20 }
 0xab7   : > { %1005 = vrot.lane.b32.xlu0 %v1001_v25, %s2427_s15 }
 0xabc   : > { %v998_v26 = vpop.permute.xlu0 %997 }
 0xabd   : > { %v1002_v27 = vmul.f32 %v998_v26, %v990_v23 }
 0xabf   : > { %1007 = vrot.lane.b32.xlu2 %v1002_v27, %s2427_s15 }
 0xb19   : > { %v1008_v29 = vpop.permute.xlu2 %1007 }
 0xb1a   : > { %v2843_v30 = vadd.f32 %v1008_v29, %v992_v28 }
 0xb1c   : > { %2191 = vtanh.f32 %v2843_v30 }
 0xb22   : > { %v2192_v31 = vpop.eup %2191 }
 0xb23   : > { %1019 = vrot.lane.b32.xlu1 %v2192_v31, %s2427_s15 }
 0xb29   : > { %v1006_v34 = vpop.permute.xlu0 %1005 }
 0xb2a   : > { %v2848_v36 = vadd.f32 %v1006_v34, %v991_v32 }
 0xb2c   : > { %2193 = vtanh.f32 %v2848_v36 }
 0xb32   : > { %v2194_v37 = vpop.eup %2193 }
 0xb33   : > { %1017 = vrot.lane.b32.xlu2 %v2194_v37, %s2427_s15 }
 0xb8d   : > { %v1018_v38 = vpop.permute.xlu2 %1017 }
 0xb8e   : > { %v2852_v41 = vmul.f32 %v1018_v38, %v989_v20 }
 0xb95   : > { %v1020_v40 = vpop.permute.xlu1 %1019 }
 0xb96   : > { %v2854_v42 = vmul.f32 %v1020_v40, %v990_v23 }
 0xb98   : > { %v2148_v43 = vpack.i.bf16 %v2852_v41, %v2854_v42 }
 0xb9a   : > { %2149 = vrot.lane.b32.xlu0 %v2148_v43, %s2430_s10 }
 0xc0c   : > { %v2150_v47 = vpop.permute.xlu0 %2149 }
 0xc0d   : > { %v2151_v49 = vunpack.i.l.bf16 %v2150_v47  ;;  %v2152_v53 = vunpack.i.h.bf16 %v2150_v47 }
 0xc0f   : > { %1047 = vmatpush.msra.mxu0 %v2151_v49  ;;  %v2004_v49 = vld [vmem:[%s2639_s7 + $0x140] sm:$0xff] }
 0xc11   : > { %1048 = vmatpush.msra.mxu0 %v2152_v53  ;;  %v2013_v53 = vld [vmem:[%s2639_s7 + $0x178] sm:$0xff] }
 0xc12   : > { %1980 = vmatmul.msk.f32.vlgmr.msra.gmra.mxu0 %vm397_vm0, %v2637_v2  ;;  %1278 = vmatpush.msrb.mxu1 %v2013_v53 }
 0xc14   : > { %1279 = vmatpush.msrb.mxu1 %v2012_v51  ;;  %v2022_v51 = vld [vmem:[%s2639_s7 + $0x180] sm:$0xff] }
 0xc16   : > { %1280 = vmatpush.msrb.mxu1 %v2011_v54  ;;  %v2031_v54 = vld [vmem:[%s2639_s7 + $0x1b8] sm:$0xff] }
 0xc18   : > { %1281 = vmatpush.msrb.mxu1 %v2010_v55  ;;  %v2030_v55 = vld [vmem:[%s2639_s7 + $0x1b0] sm:$0xff] }
 0xc1a   : > { %1981 = vmatmul.msk.f32.gmra.mxu0 %vm397_vm0, %v2649_v6 }
 0xc22   : > { %1982 = vmatmul.msk.f32.gmra.mxu0 %vm397_vm0, %v2656_v7 }
 0xc2a   : > { %1983 = vmatmul.msk.f32.gmra.mxu0 %vm397_vm0, %v2663_v8 }
 0xc8f   : > { %v1050_v58 = vpop.f32.mrf.mxu0 }
 0xc90   : > { %1990 = vmatmul.msk.f32.vlgmr.msrb.gmra.mxu3 %vm445_vm1, %v1050_v58 }
 0xc97   : > { %v1053_v59 = vpop.f32.mrf.mxu0 }
 0xc98   : > { %1991 = vmatmul.msk.f32.gmra.mxu3 %vm445_vm1, %v1053_v59 }
 0xc9f   : > { %v1056_v60 = vpop.f32.mrf.mxu0 }
 0xca0   : > { %1996 = vmatmul.msk.f32.vlgmr.msra.gmra.mxu1 %vm445_vm1, %v1056_v60 }
 0xca1   : > { %1432 = vmatpush.msra.mxu1 %v2031_v54  ;;  %v2043_v54 = vld [vmem:[%s2639_s7 + $0x1d8] sm:$0xff] }
 0xca3   : > { %1433 = vmatpush.msra.mxu1 %v2030_v55  ;;  %v2042_v55 = vld [vmem:[%s2639_s7 + $0x1d0] sm:$0xff] }
 0xca7   : > { %v1059_v61 = vpop.f32.mrf.mxu0 }
 0xca8   : > { %1997 = vmatmul.msk.f32.gmra.mxu1 %vm445_vm1, %v1059_v61  ;;  %v2002_v61 = vld [vmem:[%s2612_s27 + $0x50] sm:$0xff] }
 0xd13   : > { %v1093_v63 = vpop.f32.mrf.mxu3 }
 0xd14   : > { %v1099_v1 = vadd.f32 %v1984_v0, %v1093_v63 }
 0xd1b   : > { %v1096_v11 = vpop.f32.mrf.mxu3 }
 0xd1c   : > { %v1100_v12 = vadd.f32 %v1985_v10, %v1096_v11 }
 0xd1d   : > { %v1129_v4 = vpop.f32.mrf.mxu1 }
 0xd1e   : > { %v1135_v5 = vadd.f32 %v1129_v4, %v1099_v1 }
 0xd20   : > { %v1137_v9 = vmul.f32 %v1135_v5, %v2682_v33  ;;  %v2003_v5 = vld [vmem:[%s2612_s27 + $0x58] sm:$0xff] }
 0xd22   : > { %2195 = vtanh.f32 %v1137_v9 }
 0xd25   : > { %v1132_v13 = vpop.f32.mrf.mxu1 }
 0xd26   : > { %v1136_v14 = vadd.f32 %v1132_v13, %v1100_v12 }
 0xd28   : > { %v2196_v15 = vpop.eup %2195  ;;  %v1138_v16 = vmul.f32 %v1136_v14, %v2682_v33 }
 0xd29   : > { %v1141_v17 = vmul.f32 %v2196_v15, %v2682_v33 }
 0xd2a   : > { %2197 = vtanh.f32 %v1138_v16 }
 0xd2b   : > { %v1143_v18 = vadd.f32 %v1141_v17, %v2687_v39 }
 0xd2d   : > { %1149 = vrot.lane.b32.xlu2 %v1143_v18, %s2427_s15  ;;  %v1145_v26 = vmul.f32 %v1143_v18, %v2848_v36 }
 0xd30   : > { %v2198_v19 = vpop.eup %2197 }
 0xd31   : > { %v1142_v20 = vmul.f32 %v2198_v19, %v2682_v33 }
 0xd33   : > { %v1144_v21 = vadd.f32 %v1142_v20, %v2687_v39 }
 0xd35   : > { %1151 = vrot.lane.b32.xlu1 %v1144_v21, %s2427_s15  ;;  %v1146_v31 = vmul.f32 %v1144_v21, %v2843_v30  ;;  %v2006_v30 = vld [vmem:[%s2639_s7 + $0x150] sm:$0xff] }
 0xd36   : > { %1243 = vmatpush.msra.mxu3 %v2006_v30 }
 0xd38   : > { %1244 = vmatpush.msra.mxu3 %v2005_v46  ;;  %v2023_v46 = vld [vmem:[%s2639_s7 + $0x188] sm:$0xff] }
 0xd3a   : > { %1245 = vmatpush.msra.mxu3 %v2004_v49 }
 0xd87   : > { %v1150_v22 = vpop.permute.xlu2 %1149 }
 0xd88   : > { %v1155_v23 = vmul.f32 %v1150_v22, %v1143_v18 }
 0xd8a   : > { %1159 = vrot.lane.b32.xlu1 %v1155_v23, %s2427_s15 }
 0xda7   : > { %v1152_v24 = vpop.permute.xlu1 %1151 }
 0xda8   : > { %v1156_v25 = vmul.f32 %v1152_v24, %v1144_v21 }
 0xdaa   : > { %1161 = vrot.lane.b32.xlu0 %v1156_v25, %s2427_s15 }
 0xdfc   : > { %v1160_v27 = vpop.permute.xlu1 %1159 }
 0xdfd   : > { %v2892_v28 = vadd.f32 %v1160_v27, %v1145_v26 }
 0xdff   : > { %2199 = vtanh.f32 %v2892_v28 }
 0xe05   : > { %v2200_v29 = vpop.eup %2199 }
 0xe06   : > { %1171 = vrot.lane.b32.xlu0 %v2200_v29, %s2427_s15 }
 0xe1c   : > { %v1162_v32 = vpop.permute.xlu0 %1161 }
 0xe1d   : > { %v2897_v34 = vadd.f32 %v1162_v32, %v1146_v31 }
 0xe1f   : > { %2201 = vtanh.f32 %v2897_v34 }
 0xe25   : > { %v2202_v37 = vpop.eup %2201 }
 0xe26   : > { %1173 = vrot.lane.b32.xlu2 %v2202_v37, %s2427_s15 }
 0xe78   : > { %v1172_v36 = vpop.permute.xlu0 %1171 }
 0xe79   : > { %v1177_v38 = vmul.f32 %v1172_v36, %v1143_v18 }
 0xe7b   : > { %1181 = vrot.lane.b32.xlu2 %v1177_v38, %s2430_s10 }
 0xe80   : > { %v1174_v40 = vpop.permute.xlu2 %1173 }
 0xe81   : > { %v1178_v43 = vmul.f32 %v1174_v40, %v1144_v21 }
 0xe83   : > { %1183 = vrot.lane.b32.xlu1 %v1178_v43, %s2430_s10 }
 0xed5   : > { %v2909_v48 = vpop.permute.xlu2 %1181 }
 0xef5   : > { %v2906_v47 = vpop.permute.xlu1 %1183 }
 0xef6   : > { %1201 = vmatpush.msrb.mxu2 %v2906_v47 }
 0xef8   : > { %1202 = vmatpush.msrb.mxu2 %v2909_v48 }
 0xef9   : > { %1998 = vmatmul.msk.f32.vlgmr.msrb.gmra.mxu2 %vm397_vm0, %v2637_v2 }
 0xf01   : > { %1999 = vmatmul.msk.f32.gmra.mxu2 %vm397_vm0, %v2649_v6 }
 0xf09   : > { %2000 = vmatmul.msk.f32.gmra.mxu2 %vm397_vm0, %v2656_v7 }
 0xf11   : > { %2001 = vmatmul.msk.f32.gmra.mxu2 %vm397_vm0, %v2663_v8 }
 0xf7c   : > { %v1204_v56 = vpop.f32.mrf.mxu2 }
 0xf7d   : > { %2008 = vmatmul.msk.f32.vlgmr.msra.gmra.mxu3 %vm445_vm1, %v1204_v56  ;;  %v2029_v56 = vld [vmem:[%s2639_s7 + $0x1a8] sm:$0xff] }
 0xf7e   : > { %1434 = vmatpush.msra.mxu1 %v2029_v56  ;;  %v2041_v56 = vld [vmem:[%s2639_s7 + $0x1c8] sm:$0xff] }
 0xf84   : > { %v1207_v57 = vpop.f32.mrf.mxu2 }
 0xf85   : > { %2009 = vmatmul.msk.f32.gmra.mxu3 %vm445_vm1, %v1207_v57  ;;  %v2028_v57 = vld [vmem:[%s2639_s7 + $0x1a0] sm:$0xff] }
 0xf86   : > { %1435 = vmatpush.msra.mxu1 %v2028_v57  ;;  %v2040_v57 = vld [vmem:[%s2639_s7 + $0x1c0] sm:$0xff] }
 0xf8c   : > { %v1210_v58 = vpop.f32.mrf.mxu2 }
 0xf8d   : > { %2014 = vmatmul.msk.f32.vlgmr.msrb.gmra.mxu1 %vm445_vm1, %v1210_v58 }
 0xf94   : > { %v1213_v59 = vpop.f32.mrf.mxu2 }
 0xf95   : > { %2015 = vmatmul.msk.f32.gmra.mxu1 %vm445_vm1, %v1213_v59  ;;  %v2020_v59 = vld [vmem:[%s2612_s27 + $0x60] sm:$0xff] }
0x1000   : > { %v1247_v60 = vpop.f32.mrf.mxu3 }
0x1001   : > { %v1253_v63 = vadd.f32 %v2002_v61, %v1247_v60 }
0x1008   : > { %v1250_v9 = vpop.f32.mrf.mxu3 }
0x1009   : > { %v1254_v10 = vadd.f32 %v2003_v5, %v1250_v9 }
0x100a   : > { %v1283_v0 = vpop.f32.mrf.mxu1 }
0x100b   : > { %v1289_v1 = vadd.f32 %v1283_v0, %v1253_v63 }
0x100d   : > { %v1291_v4 = vmul.f32 %v1289_v1, %v2682_v33  ;;  %v2021_v1 = vld [vmem:[%s2612_s27 + $0x68] sm:$0xff] }
0x100f   : > { %2203 = vtanh.f32 %v1291_v4 }
0x1012   : > { %v1286_v11 = vpop.f32.mrf.mxu1 }
0x1013   : > { %v1290_v12 = vadd.f32 %v1286_v11, %v1254_v10 }
0x1015   : > { %v2204_v13 = vpop.eup %2203  ;;  %v1292_v14 = vmul.f32 %v1290_v12, %v2682_v33 }
0x1016   : > { %v1295_v15 = vmul.f32 %v2204_v13, %v2682_v33 }
0x1017   : > { %2205 = vtanh.f32 %v1292_v14 }
0x1018   : > { %v1297_v16 = vadd.f32 %v1295_v15, %v2687_v39 }
0x101a   : > { %1303 = vrot.lane.b32.xlu1 %v1297_v16, %s2427_s15  ;;  %v1299_v29 = vmul.f32 %v1297_v16, %v2892_v28  ;;  %v2025_v28 = vld [vmem:[%s2639_s7 + $0x198] sm:$0xff] }
0x101b   : > { %1396 = vmatpush.msrb.mxu3 %v2025_v28 }
0x101d   : > { %v2206_v17 = vpop.eup %2205  ;;  %1397 = vmatpush.msrb.mxu3 %v2024_v35 }
0x101e   : > { %v1296_v18 = vmul.f32 %v2206_v17, %v2682_v33 }
0x101f   : > { %1398 = vmatpush.msrb.mxu3 %v2023_v46  ;;  %v2227_v46 = vld [vmem:[%s3141_s0] sm:$0xff] }
0x1020   : > { %v1298_v19 = vadd.f32 %v1296_v18, %v2687_v39 }
0x1021   : > { %1399 = vmatpush.msrb.mxu3 %v2022_v51  ;;  %v2230_v51 = vld [vmem:[%s3141_s0 + $0x18] sm:$0xff] }
0x1022   : > { %1305 = vrot.lane.b32.xlu0 %v1298_v19, %s2427_s15  ;;  %v1300_v24 = vmul.f32 %v1298_v19, %v2897_v34 }
0x1023   : > { %1550 = vmatpush.msra.mxu3 %v2043_v54 }
0x1025   : > { %1551 = vmatpush.msra.mxu3 %v2042_v55 }
0x1027   : > { %1552 = vmatpush.msra.mxu3 %v2041_v56 }
0x1029   : > { %1553 = vmatpush.msra.mxu3 %v2040_v57 }
0x108c   : > { %v1304_v20 = vpop.permute.xlu1 %1303 }
0x108d   : > { %v1309_v21 = vmul.f32 %v1304_v20, %v1297_v16 }
0x108f   : > { %1313 = vrot.lane.b32.xlu0 %v1309_v21, %s2427_s15 }
0x1094   : > { %v1306_v22 = vpop.permute.xlu0 %1305 }
0x1095   : > { %v1310_v23 = vmul.f32 %v1306_v22, %v1298_v19 }
0x1097   : > { %1315 = vrot.lane.b32.xlu2 %v1310_v23, %s2427_s15 }
0x10f1   : > { %v1316_v25 = vpop.permute.xlu2 %1315 }
0x10f2   : > { %v2942_v26 = vadd.f32 %v1316_v25, %v1300_v24 }
0x10f4   : > { %2207 = vtanh.f32 %v2942_v26 }
0x10fa   : > { %v2208_v27 = vpop.eup %2207 }
0x10fb   : > { %1327 = vrot.lane.b32.xlu1 %v2208_v27, %s2427_s15 }
0x1101   : > { %v1314_v31 = vpop.permute.xlu0 %1313 }
0x1102   : > { %v2947_v32 = vadd.f32 %v1314_v31, %v1299_v29 }
0x1104   : > { %2209 = vtanh.f32 %v2947_v32 }
0x110a   : > { %v2210_v37 = vpop.eup %2209 }
0x110b   : > { %1325 = vrot.lane.b32.xlu2 %v2210_v37, %s2427_s15 }
0x1165   : > { %v1326_v34 = vpop.permute.xlu2 %1325 }
0x1166   : > { %v2951_v38 = vmul.f32 %v1326_v34, %v1297_v16 }
0x116d   : > { %v1328_v36 = vpop.permute.xlu1 %1327 }
0x116e   : > { %v2953_v40 = vmul.f32 %v1328_v36, %v1298_v19 }
0x1170   : > { %v2153_v43 = vpack.i.bf16 %v2951_v38, %v2953_v40 }
0x1172   : > { %2154 = vrot.lane.b32.xlu0 %v2153_v43, %s2430_s10 }
0x11e4   : > { %v2155_v30 = vpop.permute.xlu0 %2154 }
0x11e5   : > { %v2156_v49 = vunpack.i.l.bf16 %v2155_v30  ;;  %v2157_v53 = vunpack.i.h.bf16 %v2155_v30 }
0x11e7   : > { %1355 = vmatpush.msrb.mxu0 %v2156_v49  ;;  %v2228_v49 = vld [vmem:[%s3141_s0 + $0x8] sm:$0xff] }
0x11e9   : > { %1356 = vmatpush.msrb.mxu0 %v2157_v53  ;;  %v2229_v53 = vld [vmem:[%s3141_s0 + $0x10] sm:$0xff] }
0x11ea   : > { %2016 = vmatmul.msk.f32.vlgmr.msrb.gmra.mxu0 %vm397_vm0, %v2637_v2 }
0x11f2   : > { %2017 = vmatmul.msk.f32.gmra.mxu0 %vm397_vm0, %v2649_v6 }
0x11fa   : > { %2018 = vmatmul.msk.f32.gmra.mxu0 %vm397_vm0, %v2656_v7 }
0x1202   : > { %2019 = vmatmul.msk.f32.gmra.mxu0 %vm397_vm0, %v2663_v8 }
0x1267   : > { %v1358_v2 = vpop.f32.mrf.mxu0 }
0x1268   : > { %2026 = vmatmul.msk.f32.vlgmr.msrb.gmra.mxu3 %vm445_vm1, %v1358_v2  ;;  %v2049_v2 = vld [vmem:[%s2639_s7 + $0x1f8] sm:$0xff] }
0x1269   : > { %1586 = vmatpush.msrb.mxu1 %v2049_v2 }
0x126f   : > { %v1361_v6 = vpop.f32.mrf.mxu0 }
0x1270   : > { %2027 = vmatmul.msk.f32.gmra.mxu3 %vm445_vm1, %v1361_v6  ;;  %v2048_v6 = vld [vmem:[%s2639_s7 + $0x1f0] sm:$0xff] }
0x1271   : > { %1587 = vmatpush.msrb.mxu1 %v2048_v6 }
0x1277   : > { %v1364_v7 = vpop.f32.mrf.mxu0 }
0x1278   : > { %2032 = vmatmul.msk.f32.vlgmr.msra.gmra.mxu1 %vm445_vm1, %v1364_v7  ;;  %v2047_v7 = vld [vmem:[%s2639_s7 + $0x1e8] sm:$0xff] }
0x1279   : > { %1588 = vmatpush.msrb.mxu1 %v2047_v7 }
0x127f   : > { %v1367_v8 = vpop.f32.mrf.mxu0 }
0x1280   : > { %2033 = vmatmul.msk.f32.gmra.mxu1 %vm445_vm1, %v1367_v8  ;;  %v2046_v8 = vld [vmem:[%s2639_s7 + $0x1e0] sm:$0xff]  ;;  %s1910_s7 = sshll.u32 %s2608_s23, 5 }
0x1281   : > { %1589 = vmatpush.msrb.mxu1 %v2046_v8  ;;  %s3067_s30 = scalar_lea.vmem [#allocation8], %s1910_s7 }
0x12eb   : > { %v1401_v58 = vpop.f32.mrf.mxu3 }
0x12ec   : > { %v1407_v60 = vadd.f32 %v2020_v59, %v1401_v58 }
0x12f3   : > { %v1404_v4 = vpop.f32.mrf.mxu3 }
0x12f4   : > { %v1408_v5 = vadd.f32 %v2021_v1, %v1404_v4 }
0x12f5   : > { %v1437_v61 = vpop.f32.mrf.mxu1 }
0x12f6   : > { %v1443_v63 = vadd.f32 %v1437_v61, %v1407_v60 }
0x12f8   : > { %v1445_v0 = vmul.f32 %v1443_v63, %v2682_v33 }
0x12fa   : > { %2211 = vtanh.f32 %v1445_v0  ;;  %v2038_v0 = vld [vmem:[%s2612_s27 + $0x70] sm:$0xff] }
0x12fd   : > { %v1440_v9 = vpop.f32.mrf.mxu1 }
0x12fe   : > { %v1444_v10 = vadd.f32 %v1440_v9, %v1408_v5 }
0x1300   : > { %v2212_v11 = vpop.eup %2211  ;;  %v1446_v12 = vmul.f32 %v1444_v10, %v2682_v33  ;;  %v2039_v10 = vld [vmem:[%s2612_s27 + $0x78] sm:$0xff]  ;;  %s2431_s27 = smov 96  }
0x1301   : > { %v1449_v13 = vmul.f32 %v2212_v11, %v2682_v33 }
0x1302   : > { %2213 = vtanh.f32 %v1446_v12 }
0x1303   : > { %v1451_v14 = vadd.f32 %v1449_v13, %v2687_v39 }
0x1305   : > { %1457 = vrot.lane.b32.xlu2 %v1451_v14, %s2427_s15  ;;  %v1453_v22 = vmul.f32 %v1451_v14, %v2947_v32 }
0x1308   : > { %v2214_v15 = vpop.eup %2213 }
0x1309   : > { %v1450_v16 = vmul.f32 %v2214_v15, %v2682_v33 }
0x130b   : > { %v1452_v17 = vadd.f32 %v1450_v16, %v2687_v39 }
0x130d   : > { %1459 = vrot.lane.b32.xlu1 %v1452_v17, %s2427_s15  ;;  %v1454_v27 = vmul.f32 %v1452_v17, %v2942_v26 }
0x135f   : > { %v1458_v18 = vpop.permute.xlu2 %1457 }
0x1360   : > { %v1463_v19 = vmul.f32 %v1458_v18, %v1451_v14 }
0x1362   : > { %1467 = vrot.lane.b32.xlu1 %v1463_v19, %s2427_s15 }
0x137f   : > { %v1460_v20 = vpop.permute.xlu1 %1459 }
0x1380   : > { %v1464_v21 = vmul.f32 %v1460_v20, %v1452_v17 }
0x1382   : > { %1469 = vrot.lane.b32.xlu0 %v1464_v21, %s2427_s15 }
0x13d4   : > { %v1468_v23 = vpop.permute.xlu1 %1467 }
0x13d5   : > { %v2991_v24 = vadd.f32 %v1468_v23, %v1453_v22 }
0x13d7   : > { %2215 = vtanh.f32 %v2991_v24 }
0x13dd   : > { %v2216_v25 = vpop.eup %2215 }
0x13de   : > { %1479 = vrot.lane.b32.xlu0 %v2216_v25, %s2427_s15 }
0x13f4   : > { %v1470_v29 = vpop.permute.xlu0 %1469 }
0x13f5   : > { %v2996_v31 = vadd.f32 %v1470_v29, %v1454_v27 }
0x13f7   : > { %2217 = vtanh.f32 %v2996_v31 }
0x13fd   : > { %v2218_v37 = vpop.eup %2217 }
0x13fe   : > { %1481 = vrot.lane.b32.xlu2 %v2218_v37, %s2427_s15 }
0x1450   : > { %v1480_v34 = vpop.permute.xlu0 %1479 }
0x1451   : > { %v3000_v36 = vmul.f32 %v1480_v34, %v1451_v14 }
0x1458   : > { %v1482_v32 = vpop.permute.xlu2 %1481 }
0x1459   : > { %v3002_v43 = vmul.f32 %v1482_v32, %v1452_v17 }
0x145b   : > { %v2158_v28 = vpack.i.bf16 %v3000_v36, %v3002_v43 }
0x145d   : > { %2159 = vrot.lane.b32.xlu1 %v2158_v28, %s2430_s10  ;;  %s1701_s10 = scalar_lea.sflag [#allocation10], %s2608_s23 }
0x14cf   : > { %v2160_v26 = vpop.permute.xlu1 %2159 }
0x14d0   : > { %v2161_v35 = vunpack.i.l.bf16 %v2160_v26  ;;  %v2162_v30 = vunpack.i.h.bf16 %v2160_v26 }
0x14d2   : > { %1509 = vmatpush.msra.mxu2 %v2161_v35 }
0x14d4   : > { %1510 = vmatpush.msra.mxu2 %v2162_v30 }
0x14d5   : > { %2034 = vmatmul.msk.f32.vlgmr.msra.gmra.mxu2 %vm397_vm0, %v2227_v46 }
0x14dd   : > { %2035 = vmatmul.msk.f32.gmra.mxu2 %vm397_vm0, %v2228_v49 }
0x14e5   : > { %2036 = vmatmul.msk.f32.gmra.mxu2 %vm397_vm0, %v2229_v53 }
0x14ed   : > { %2037 = vmatmul.msk.f32.gmra.mxu2 %vm397_vm0, %v2230_v51 }
0x1558   : > { %v1512_v58 = vpop.f32.mrf.mxu2 }
0x1559   : > { %2044 = vmatmul.msk.f32.vlgmr.msra.gmra.mxu3 %vm445_vm1, %v1512_v58 }
0x1560   : > { %v1515_v59 = vpop.f32.mrf.mxu2 }
0x1561   : > { %2045 = vmatmul.msk.f32.gmra.mxu3 %vm445_vm1, %v1515_v59 }
0x1568   : > { %v1518_v60 = vpop.f32.mrf.mxu2 }
0x1569   : > { %2050 = vmatmul.msk.f32.vlgmr.msrb.gmra.mxu1 %vm445_vm1, %v1518_v60 }
0x1570   : > { %v1521_v61 = vpop.f32.mrf.mxu2 }
0x1571   : > { %2051 = vmatmul.msk.f32.gmra.mxu1 %vm445_vm1, %v1521_v61 }
0x15dc   : > { %v1555_v63 = vpop.f32.mrf.mxu3 }
0x15dd   : > { %v1561_v1 = vadd.f32 %v2038_v0, %v1555_v63 }
0x15e4   : > { %v1558_v11 = vpop.f32.mrf.mxu3 }
0x15e5   : > { %v1562_v12 = vadd.f32 %v2039_v10, %v1558_v11 }
0x15e6   : > { %v1591_v4 = vpop.f32.mrf.mxu1 }
0x15e7   : > { %v1597_v5 = vadd.f32 %v1591_v4, %v1561_v1 }
0x15e9   : > { %v1599_v9 = vmul.f32 %v1597_v5, %v2682_v33 }
0x15eb   : > { %2219 = vtanh.f32 %v1599_v9 }
0x15ee   : > { %v1594_v13 = vpop.f32.mrf.mxu1 }
0x15ef   : > { %v1598_v14 = vadd.f32 %v1594_v13, %v1562_v12 }
0x15f1   : > { %v2220_v15 = vpop.eup %2219  ;;  %v1600_v16 = vmul.f32 %v1598_v14, %v2682_v33 }
0x15f2   : > { %v1603_v17 = vmul.f32 %v2220_v15, %v2682_v33 }
0x15f3   : > { %2221 = vtanh.f32 %v1600_v16 }
0x15f4   : > { %v1605_v18 = vadd.f32 %v1603_v17, %v2687_v39 }
0x15f6   : > { %1611 = vrot.lane.b32.xlu2 %v1605_v18, %s2427_s15  ;;  %v1607_v29 = vmul.f32 %v1605_v18, %v2991_v24 }
0x15f9   : > { %v2222_v19 = vpop.eup %2221 }
0x15fa   : > { %v1604_v20 = vmul.f32 %v2222_v19, %v2682_v33 }
0x15fc   : > { %v1606_v21 = vadd.f32 %v1604_v20, %v2687_v39 }
0x15fe   : > { %1613 = vrot.lane.b32.xlu0 %v1606_v21, %s2427_s15  ;;  %v1608_v39 = vmul.f32 %v1606_v21, %v2996_v31 }
0x1650   : > { %v1612_v22 = vpop.permute.xlu2 %1611 }
0x1651   : > { %v1617_v23 = vmul.f32 %v1612_v22, %v1605_v18 }
0x1653   : > { %1621 = vrot.lane.b32.xlu1 %v1617_v23, %s2427_s15 }
0x1670   : > { %v1614_v25 = vpop.permute.xlu0 %1613 }
0x1671   : > { %v1618_v27 = vmul.f32 %v1614_v25, %v1606_v21 }
0x1673   : > { %1623 = vrot.lane.b32.xlu2 %v1618_v27, %s2427_s15 }
0x167b   : > { %1641 = vrot.lane.b32.xlu2 %v2754_v50, %s2431_s27 }
0x1683   : > { %1655 = vrot.lane.b32.xlu2 %v2953_v40, %s2431_s27 }
0x16c5   : > { %v1622_v33 = vpop.permute.xlu1 %1621 }
0x16c6   : > { %v1627_v37 = vadd.f32 %v1622_v33, %v1607_v29 }
0x16c8   : > { %2223 = vtanh.f32 %v1627_v37 }
0x16cd   : > { %v1624_v34 = vpop.permute.xlu2 %1623 }
0x16ce   : > { %v2224_v32 = vpop.eup %2223  ;;  %v1628_v28 = vadd.f32 %v1624_v34, %v1608_v39 }
0x16cf   : > { %1633 = vrot.lane.b32.xlu0 %v2224_v32, %s2427_s15 }
0x16d0   : > { %2225 = vtanh.f32 %v1628_v28 }
0x16d5   : > { %v1642_v30 = vpop.permute.xlu2 %1641 }
0x16d6   : > { %v2226_v26 = vpop.eup %2225 }
0x16d7   : > { %1643 = vrot.lane.b32.xlu0 %v2756_v52, %s2431_s27  ;;  %1635 = vrot.lane.b32.xlu1 %v2226_v26, %s2427_s15  ;;  %v1667_v52 = vsel %vm445_vm1, %v2712_v3, %v1642_v30 }
0x16dd   : > { %v1656_v54 = vpop.permute.xlu2 %1655 }
0x16df   : > { %1647 = vrot.lane.b32.xlu0 %v2852_v41, %s2427_s15  ;;  %1653 = vrot.lane.b32.xlu1 %v2951_v38, %s2431_s27  ;;  %v1670_v41 = vsel %vm1669_vm3, %v1667_v52, %v2803_v44 }
0x16e7   : > { %1649 = vrot.lane.b32.xlu1 %v2854_v42, %s2427_s15 }
0x16ef   : > { %1687 = vrot.lane.b32.xlu1 %v1627_v37, %s2431_s27 }
0x1741   : > { %v1634_v50 = vpop.permute.xlu0 %1633 }
0x1742   : > { %v1639_v40 = vmul.f32 %v1634_v50, %v1605_v18 }
0x1744   : > { %1661 = vrot.lane.b32.xlu2 %v1639_v40, %s2427_s15 }
0x1749   : > { %v1644_v24 = vpop.permute.xlu0 %1643  ;;  %v1636_v31 = vpop.permute.xlu1 %1635 }
0x174a   : > { %v1640_v35 = vmul.f32 %v1636_v31, %v1606_v21  ;;  %v1668_v49 = vsel %vm445_vm1, %v2706_v62, %v1644_v24 }
0x174b   : > { %v1671_v3 = vsel %vm1669_vm3, %v1668_v49, %v2805_v45 }
0x174c   : > { %1689 = vrot.lane.b32.xlu2 %v1628_v28, %s2431_s27  ;;  %1663 = vrot.lane.b32.xlu0 %v1640_v35, %s2427_s15  ;;  %s1732_s15 = sshll.u32 %s1729_s11, 4  ;;  %s1733_s15 = int_to_ptr.hbm [resolvable:$true] %s1732_s15 }
0x174d   : > { %s2335_s13 = sshra.s32 %s1733_s15, 4  ;;  %s2336_s13 = int_to_ptr.hbm [resolvable:$true] %s2335_s13 }
0x174e   : > { %s2337_s18 = scalar_lea.hbm %s2336_s13, 16  ;;  %p2342_p4 = scmp.lt.s32.totalorder %s2336_s13, %s3147_s6 }
0x174f   : > { %p2338_p6 = scmp.ne.s32.totalorder %s2336_s13, %s2337_s18  ;;  %p2343_p0 = scmp.lt.s32.totalorder %s2341_s12, %s2337_s18 }
0x1751   : > { %v1648_v42 = vpop.permute.xlu0 %1647  ;;  %v1654_v38 = vpop.permute.xlu1 %1653  ;;  %p2339_p2 = pnand %p2338_p6, %p2517_p11  ;;  %p2344_p5 = por %p2343_p0, %p2342_p4 }
0x1752   : > { %v1673_v46 = vsel %vm1672_vm4, %v1670_v41, %v1648_v42  ;;  %v1675_v55 = vsel %vm445_vm1, %v2909_v48, %v1654_v38 }
0x1753   : > { %1681 = vst [vmem:[%s3067_s30] sm:$0xff] %v1673_v46  ;;  %v1677_v45 = vsel %vm1669_vm3, %v1675_v55, %v3000_v36  ;;  %p2340_p3 = pneg %p2339_p2 }
0x1755   : > { %p2345_p7 = pnand %p2344_p5, %p2340_p3 }
0x1759   : > { %v1650_v53 = vpop.permute.xlu1 %1649 }
0x175a   : > { %v1674_v44 = vsel %vm1672_vm4, %v1671_v3, %v1650_v53 }
0x175b   : > { %1683 = vst [vmem:[%s3067_s30 + $0x10] sm:$0xff] %v1674_v44 }
0x1761   : > { %v1688_v51 = vpop.permute.xlu1 %1687 }
0x1762   : > { %1693 = vst.msk [vmem:[%s378_s19] sm:$0xff] %vm445_vm1, %v1688_v51 }
0x179e   : > { %v1662_v62 = vpop.permute.xlu2 %1661 }
0x179f   : > { %v1679_v56 = vsel %vm1672_vm4, %v1677_v45, %v1662_v62 }
0x17a0   : > { %1682 = vst [vmem:[%s3067_s30 + $0x8] sm:$0xff] %v1679_v56 }
0x17a6   : > { %v1690_v57 = vpop.permute.xlu2 %1689 }
0x17a7   : > { %1694 = vst.msk [vmem:[%s378_s19 + $0x8] sm:$0xff] %vm445_vm1, %v1690_v57 }
0x17a8   : > { %2348 = shalt.err (!%p2345_p7)
}
0x17a9   : > { %s2432_s3 = smov 128   ;;  %s2433_s27 = smov 8   ;;  %v1676_v48 = vsel %vm445_vm1, %v2906_v47, %v1656_v54 }
0x17aa   : > { %2073 = dma.vmem_to_hbm [thread:$0]  (%p2517_p11), %s1731_s26, 256, %s1733_s15, %s1701_s10, %s2432_s3, %s2432_s3, %s2433_s27   ;;  %v1678_v36 = vsel %vm1669_vm3, %v1676_v48, %v3002_v43 }
0x17ab   : > { %s2064_s7 = sshll.u32 %s2492_s25, 5  ;;  %s1713_s16 = sshll.u32 %s3067_s30, 4  ;;  %s1714_s16 = int_to_ptr.vmem [resolvable:$true] %s1713_s16 }
0x17ac   : > { %s1712_s9 = scalar_lea.hbm %s3146_s5, %s2064_s7  ;;  %s1696_s25 = scalar_lea.sflag [#allocation4], %s2608_s23 }
0x17ad   : > { %s1715_s11 = sshll.u32 %s1712_s9, 4  ;;  %s2369_s18 = scalar_lea.hbm %s3146_s5, 64  ;;  %s1716_s11 = int_to_ptr.hbm [resolvable:$true] %s1715_s11 }
0x17ae   : > { %s2363_s26 = sshra.s32 %s1716_s11, 4  ;;  %s2364_s26 = int_to_ptr.hbm [resolvable:$true] %s2363_s26 }
0x17af   : > { %s2365_s15 = scalar_lea.hbm %s2364_s26, 32  ;;  %p2370_p13 = scmp.lt.s32.totalorder %s2364_s26, %s3146_s5 }
0x17b0   : > { %p2366_p8 = scmp.ne.s32.totalorder %s2364_s26, %s2365_s15  ;;  %p2371_p6 = scmp.lt.s32.totalorder %s2369_s18, %s2365_s15 }
0x17b2   : > { %p2367_p10 = pnand %p2366_p8, %p2517_p11  ;;  %p2372_p2 = por %p2371_p6, %p2370_p13 }
0x17b4   : > { %p2368_p1 = pneg %p2367_p10 }
0x17b6   : > { %p2373_p3 = pnand %p2372_p2, %p2368_p1 }
0x17be   : > { %v1664_v2 = vpop.permute.xlu0 %1663 }
0x17bf   : > { %v1680_v6 = vsel %vm1672_vm4, %v1678_v36, %v1664_v2 }
0x17c0   : > { %1684 = vst [vmem:[%s3067_s30 + $0x18] sm:$0xff] %v1680_v6 }
0x17c1   : > { %2376 = shalt.err (!%p2373_p3)
}
0x17c2   : > { %s2434_s23 = smov 256   ;;  %s2435_s30 = smov 16  }
0x17c3   : > { %2072 = dma.vmem_to_hbm [thread:$0]  (%p2517_p11), %s1714_s16, 512, %s1716_s11, %s1696_s25, %s2434_s23, %s2434_s23, %s2435_s30  }
0x17c4 PF: > { %s1747_s14 = sand.u32 1, %s2411_s21   ;;  %p2087_p4 = pnand %p1896_p9, %p2521_p12 }
0x17c5   : > { %s1748_s28 = scalar_lea.sflag [#allocation4], %s1747_s14 }
0x17c6   : > { %p2088_p0 = pneg %p2087_p4 }
0x17c8   : > { %2402 = dma.done.wait (%p2088_p0), %s1748_s28, 512  }
0x17c9   : > { %2404 = vsyncadd (%p2088_p0), %s1748_s28, 4294966784  ;;  %s1758_s3 = scalar_lea.sflag [#allocation10], %s1747_s14 }
0x17ca   : > { %2406 = dma.done.wait (%p2088_p0), %s1758_s3, 256  }
0x17cb   : > { %2408 = vsyncadd (%p2088_p0), %s1758_s3, 4294967040  ;;  %s3170_s24 = sld [smem:[#allocation16_spill]]  ;;  %s3173_s21 = smov %s2415_s22 }
0x17cc   : > { %s3171_s27 = sld [smem:[#allocation15_spill]] }
0x17cd   : > { %s3172_s23 = sld [smem:[#allocation17_spill]] }
0x17d1   : > { %p26_p11 = scmp.ge.s32.totalorder %s3170_s24, 4  }
0x17d2   : > { %s3174_s22 = smov %s3171_s27 }
0x17d3   :  { %28 = sbr.rel (!%p26_p11) target bundleno = 11 (0xb), region = 151 }
0x17d8   :  { %1764 = vsyncpa [#allocation3], 1 }
0x17d9   :  { %1766 = vsyncpa [#allocation3 + $0x1], 1 }
0x17da   :  { %1767 = vsyncpa [#allocation6], 1 }
0x17db   :  { %1769 = vsyncpa [#allocation6 + $0x1], 1 }
0x17dc   :  { %1770 = vsyncpa [#allocation4], 1 }
0x17dd   :  { %1772 = vsyncpa [#allocation4 + $0x1], 1 }
0x17de   :  { %1773 = vsyncpa [#allocation10], 1 }
0x17df   :  { %1775 = vsyncpa [#allocation10 + $0x1], 1 }

</bundles_post_ra>
